<compile_context>
chip_gen: v7x
topology: tpu7x:2x2x1
jax: 0.10.0
libtpu: 0.0.40
codegen_flags: <defaults>
</compile_context>

<pallas_src>
import functools

import jax
import jax.numpy as jnp
from jax.experimental import pallas as pl
from jax.experimental.pallas import tpu as pltpu

NEG_SLOPE = 0.2
MASK_BIG = 1e30  # finite "minus infinity" for masked (non-edge) scores


def _gat_kernel(flags_ref, el_ref, adj_ref, z_ref, resb_ref, o_ref,
                m_sc, acc_sc, *, f_out):
    i = pl.program_id(0)
    j = pl.program_id(1)
    n_j = pl.num_programs(1)

    @pl.when(j == 0)
    def _init():
        m_sc[...] = jnp.full_like(m_sc, -MASK_BIG)
        acc_sc[...] = jnp.zeros_like(acc_sc)

    # Skip whole src blocks with no edges into this dst block (sparse graphs).
    @pl.when(flags_ref[i * n_j + j] != 0)
    def _body():
        adj = adj_ref[...]                                  # [Tdst,Tsrc] bf16 0/1
        er = resb_ref[:, f_out:f_out + 1]                   # [Tdst, 1] f32
        scores = er + el_ref[...]                           # [Tdst, Tsrc]
        scores = jnp.maximum(scores, NEG_SLOPE * scores)    # LeakyReLU (mul+max)
        masked = jnp.where(adj != 0, scores, -MASK_BIG)     # -1e30 off-edge

        # Online (flash-style) softmax over src blocks.
        m_new = jnp.maximum(m_sc[...], jnp.max(masked, axis=-1, keepdims=True))
        a = jnp.exp(m_sc[...] - m_new)                      # rescale factor
        # Zeroing by adj is load-bearing: a dst row with no edges seen yet has
        # m_new == -MASK_BIG, so exp(masked - m_new) == 1 everywhere.
        p = jnp.exp(masked - m_new).astype(jnp.bfloat16) * adj   # packed bf16

        # z column f_out is a literal 1.0, so acc[:, f_out] carries the softmax
        # denominator via the same MXU pass (no XLU row reduction).
        acc_sc[...] = a * acc_sc[...] + jnp.dot(
            p, z_ref[...], preferred_element_type=jnp.float32)
        m_sc[...] = m_new

    @pl.when(j == n_j - 1)
    def _finalize():
        l = acc_sc[:, f_out:f_out + 1]                      # row-sum of p
        inv_l = pl.reciprocal(l, approx=True)               # deferred divide (EUP)
        inv_l = jnp.where(l > 0.0, inv_l, 0.0)              # zero in-degree guard
        o_ref[...] = (acc_sc[...] * inv_l + resb_ref[...]).astype(o_ref.dtype)


def gat_forward(x, adj, w, w_res, a_l, a_r, bias, *, tile_dst=512, tile_src=1024):
    """Single-head GATConv forward.

    x:[N,F_in] f32, adj:[N_dst,N_src] 0/1, w/w_res:[F_in,F_out],
    a_l/a_r/bias:[1,F_out]. Returns [N, 1, F_out] (DGL (N, heads, out) layout).

    Tile guidance: sweep tile_dst in {512, 1024}, tile_src in {1024, 2048}
    (VMEM use stays < 12 MiB even at (1024, 2048)); on v7x keep
    N // tile_dst >= 2 so both TensorCores are used. Tiles are clamped to N.
    """
    n, f_in = x.shape
    f_out = w.shape[1]
    # Pad the feature dim to a lane-dense multiple of 128; column f_out of the
    # padded z carries a literal 1.0 (denominator on the MXU) and column f_out
    # of the residual block carries er.
    fp = ((f_out + 1 + 127) // 128) * 128

    tile_dst = min(tile_dst, n)
    tile_src = min(tile_src, n)
    assert n % tile_dst == 0 and n % tile_src == 0, "N must be divisible by tiles"

    # --- Hoisted O(N*F) projections (tiny vs the O(N^2) kernel work) ---------
    z = x @ w                                                # [N, F_out]
    el_row = (z @ a_l[0]).reshape(1, n)                      # [1, N]
    er = z @ a_r[0]                                          # [N]
    resb = jnp.zeros((n, fp), jnp.float32)
    resb = resb.at[:, :f_out].set(x @ w_res + bias).at[:, f_out].set(er)

    zp = jnp.zeros((n, fp), jnp.float32)
    zp = zp.at[:, :f_out].set(z).at[:, f_out].set(1.0)
    zp = zp.astype(jnp.bfloat16)                             # aggregation in bf16

    # adj is the only O(N^2) HBM stream: ship it as bf16 (values exact 0/1).
    # (v5e option: int8 + in-kernel cast to take the DMA off the critical path.)
    adj_bf = adj.astype(jnp.bfloat16)

    gi, gj = n // tile_dst, n // tile_src
    # Per-block nonzero flags for the sparse block-skip (flattened 1-D for SMEM).
    blk = adj.reshape(gi, tile_dst, gj, tile_src)
    flags = (jnp.sum(blk, axis=(1, 3)) > 0).astype(jnp.int32).reshape(-1)

    kernel = functools.partial(_gat_kernel, f_out=f_out)

    flops = 2 * n * n * fp + 8 * n * n
    bytes_accessed = 2 * n * n + 2 * gi * n * fp + 4 * n * fp * 2 + 4 * n

    out = pl.pallas_call(
        kernel,
        out_shape=jax.ShapeDtypeStruct((n, fp), jnp.float32),
        grid_spec=pltpu.PrefetchScalarGridSpec(
            num_scalar_prefetch=1,
            grid=(gi, gj),
            in_specs=[
                pl.BlockSpec((1, tile_src), lambda i, j, fl: (0, j)),       # el row
                pl.BlockSpec((tile_dst, tile_src), lambda i, j, fl: (i, j)),  # adj tile
                pl.BlockSpec((tile_src, fp), lambda i, j, fl: (j, 0)),      # z (src rows)
                pl.BlockSpec((tile_dst, fp), lambda i, j, fl: (i, 0)),      # residual+bias | er
            ],
            out_specs=pl.BlockSpec((tile_dst, fp), lambda i, j, fl: (i, 0)),
            scratch_shapes=[
                pltpu.VMEM((tile_dst, 1), jnp.float32),    # running max
                pltpu.VMEM((tile_dst, fp), jnp.float32),   # running p@z (+ denom col)
            ]),
        compiler_params=pltpu.CompilerParams(
            dimension_semantics=("parallel", "arbitrary"),
            vmem_limit_bytes=32 * 1024 * 1024),
        cost_estimate=pl.CostEstimate(
            flops=flops, transcendentals=n * n, bytes_accessed=bytes_accessed),
    )(flags, el_row, adj_bf, zp, resb)

    # Slice off lane padding; match DGL GATConv output shape (N, heads=1, F_out).
    return out[:, :f_out].reshape(n, 1, f_out)


def gat_reference(x, adj, w, w_res, a_l, a_r, bias):
    z = x @ w
    el = jnp.sum(z * a_l, axis=-1, keepdims=True)
    er = jnp.sum(z * a_r, axis=-1, keepdims=True)
    scores = er + el.T
    scores = jnp.where(scores >= 0, scores, NEG_SLOPE * scores)
    edge = adj > 0
    masked = jnp.where(edge, scores, -MASK_BIG)
    m = jnp.max(masked, axis=-1, keepdims=True)
    p = jnp.where(edge, jnp.exp(masked - m), 0.0)
    alpha = p / jnp.sum(p, axis=-1, keepdims=True)
    out = alpha @ z + x @ w_res + bias
    return out.reshape(x.shape[0], 1, w.shape[1])


if __name__ == "__main__":
    key = jax.random.PRNGKey(0)
    k_x, k_adj, k_w, k_wres, k_al, k_ar, k_b = jax.random.split(key, 7)

    N = 256         # number of graph nodes (exercises a 2x1 dst x src grid)
    F_IN = 16       # in_channels
    F_OUT = 32      # out_channels (!= F_IN => residual uses a Linear, like DGL)

    # Node features.
    x = jax.random.normal(k_x, (N, F_IN), dtype=jnp.float32)

    # Dense adjacency: random edges + self-loops (guarantees no zero in-degree,
    # matching DGL's allow_zero_in_degree requirement).
    adj = (jax.random.uniform(k_adj, (N, N)) < 0.10).astype(jnp.float32)
    adj = jnp.maximum(adj, jnp.eye(N, dtype=jnp.float32))

    # Deterministic parameter init (xavier-ish scaling).
    w = jax.random.normal(k_w, (F_IN, F_OUT), dtype=jnp.float32) * (1.0 / jnp.sqrt(F_IN))
    w_res = jax.random.normal(k_wres, (F_IN, F_OUT), dtype=jnp.float32) * (1.0 / jnp.sqrt(F_IN))
    a_l = jax.random.normal(k_al, (1, F_OUT), dtype=jnp.float32) * 0.1
    a_r = jax.random.normal(k_ar, (1, F_OUT), dtype=jnp.float32) * 0.1
    bias = jax.random.normal(k_b, (1, F_OUT), dtype=jnp.float32) * 0.01

    # tile_dst=128 keeps the dst ("parallel") axis at 2 tiles for this small N.
    out = gat_forward(x, adj, w, w_res, a_l, a_r, bias, tile_dst=128, tile_src=256)
    jax.block_until_ready(out)

    ref = gat_reference(x, adj, w, w_res, a_l, a_r, bias)
    assert out.shape == (N, 1, F_OUT)
    # Tolerance covers the intentional bf16 P@Z aggregation + approx reciprocal.
    err = jnp.max(jnp.abs(out - ref))
    assert jnp.allclose(out, ref, atol=3e-2, rtol=3e-2), f"mismatch vs reference (max abs err {err:.3e})"

    print("KERNEL_OK")
</pallas_src>

<mosaic_0001>
module attributes {stable_mosaic.version = 11 : i64} {
  func.func @_gat_kernel(%arg0: i32, %arg1: i32, %arg2: memref<2xi32, #tpu.memory_space<smem>>, %arg3: memref<1x256xf32, #tpu.memory_space<vmem>>, %arg4: memref<128x256xbf16, #tpu.memory_space<vmem>>, %arg5: memref<256x128xbf16, #tpu.memory_space<vmem>>, %arg6: memref<128x128xf32, #tpu.memory_space<vmem>>, %arg7: memref<128x128xf32, #tpu.memory_space<vmem>>, %arg8: memref<128x1xf32, #tpu.memory_space<vmem>>, %arg9: memref<128x128xf32, #tpu.memory_space<vmem>>) attributes {dimension_semantics = [#tpu.dimension_semantics<parallel>, #tpu.dimension_semantics<arbitrary>], iteration_bounds = array<i64: 2, 1>, scalar_prefetch = 1 : i64, scratch_operands = 2 : i64, tpu.core_type = #tpu.core_type<tc>, window_params = [{transform_indices = @transform_0, window_bounds = array<i64: 1, 256>}, {transform_indices = @transform_1, window_bounds = array<i64: 128, 256>}, {transform_indices = @transform_2, window_bounds = array<i64: 256, 128>}, {transform_indices = @transform_3, window_bounds = array<i64: 128, 128>}, {transform_indices = @transform_4, window_bounds = array<i64: 128, 128>}]} {
    %c0_i32 = arith.constant 0 : i32
    %0 = arith.cmpi eq, %arg1, %c0_i32 : i32
    %1 = arith.extui %0 : i1 to i32
    %c0_i32_0 = arith.constant 0 : i32
    %2 = arith.cmpi ne, %1, %c0_i32_0 : i32
    scf.if %2 {
      %cst = arith.constant -1.000000e+30 : f32
      %13 = vector.broadcast %cst : f32 to vector<128x1xf32>
      %c0 = arith.constant 0 : index
      %c0_5 = arith.constant 0 : index
      %14 = vector.load %arg8[%c0, %c0_5] : memref<128x1xf32, #tpu.memory_space<vmem>>, vector<128x1xf32>
      tpu.vector_store %arg8[%c0, %c0_5], %13 {strides = array<i32>} : memref<128x1xf32, #tpu.memory_space<vmem>>, vector<128x1xf32>,
      %cst_6 = arith.constant 0.000000e+00 : f32
      %15 = vector.broadcast %cst_6 : f32 to vector<128x128xf32>
      %c0_7 = arith.constant 0 : index
      %c0_8 = arith.constant 0 : index
      %16 = vector.load %arg9[%c0_7, %c0_8] : memref<128x128xf32, #tpu.memory_space<vmem>>, vector<128x128xf32>
      tpu.vector_store %arg9[%c0_7, %c0_8], %15 {strides = array<i32>} : memref<128x128xf32, #tpu.memory_space<vmem>>, vector<128x128xf32>,
    } else {
    }
    %c1_i32 = arith.constant 1 : i32
    %3 = arith.muli %arg0, %c1_i32 : i32
    %4 = arith.addi %3, %arg1 : i32
    %5 = arith.index_cast %4 : i32 to index
    %6 = memref.load %arg2[%5] : memref<2xi32, #tpu.memory_space<smem>>
    %c0_i32_1 = arith.constant 0 : i32
    %7 = arith.cmpi ne, %6, %c0_i32_1 : i32
    %8 = arith.extui %7 : i1 to i32
    %c0_i32_2 = arith.constant 0 : i32
    %9 = arith.cmpi ne, %8, %c0_i32_2 : i32
    scf.if %9 {
      %c0 = arith.constant 0 : index
      %c0_5 = arith.constant 0 : index
      %13 = vector.load %arg4[%c0, %c0_5] : memref<128x256xbf16, #tpu.memory_space<vmem>>, vector<128x256xbf16>
      %c0_6 = arith.constant 0 : index
      %c32 = arith.constant 32 : index
      %14 = vector.load %arg6[%c0_6, %c32] : memref<128x128xf32, #tpu.memory_space<vmem>>, vector<128x1xf32>
      %c0_7 = arith.constant 0 : index
      %c0_8 = arith.constant 0 : index
      %15 = vector.load %arg3[%c0_7, %c0_8] : memref<1x256xf32, #tpu.memory_space<vmem>>, vector<1x256xf32>
      %16 = vector.broadcast %14 : vector<128x1xf32> to vector<128x256xf32>
      %17 = vector.broadcast %15 : vector<1x256xf32> to vector<128x256xf32>
      %18 = arith.addf %16, %17 : vector<128x256xf32>
      %cst = arith.constant 2.000000e-01 : f32
      %19 = vector.broadcast %cst : f32 to vector<128x256xf32>
      %20 = arith.mulf %19, %18 : vector<128x256xf32>
      %21 = arith.maximumf %18, %20 : vector<128x256xf32>
      %cst_9 = arith.constant 0.000000e+00 : bf16
      %22 = vector.broadcast %cst_9 : bf16 to vector<128x256xbf16>
      %23 = arith.cmpf one, %13, %22 : vector<128x256xbf16>
      %cst_10 = arith.constant -1.000000e+30 : f32
      %24 = vector.broadcast %cst_10 : f32 to vector<128x256xf32>
      %25 = arith.select %23, %21, %24 : vector<128x256xi1>, vector<128x256xf32>
      %c0_11 = arith.constant 0 : index
      %c0_12 = arith.constant 0 : index
      %26 = vector.load %arg8[%c0_11, %c0_12] : memref<128x1xf32, #tpu.memory_space<vmem>>, vector<128x1xf32>
      %cst_13 = arith.constant dense<0xFF800000> : vector<128xf32>
      %27 = vector.multi_reduction <maximumf>, %25, %cst_13 [1] : vector<128x256xf32> to vector<128xf32>
      %28 = vector.shape_cast %27 : vector<128xf32> to vector<128x1xf32>
      %29 = arith.maximumf %26, %28 : vector<128x1xf32>
      %c0_14 = arith.constant 0 : index
      %c0_15 = arith.constant 0 : index
      %30 = vector.load %arg8[%c0_14, %c0_15] : memref<128x1xf32, #tpu.memory_space<vmem>>, vector<128x1xf32>
      %31 = arith.subf %30, %29 : vector<128x1xf32>
      %32 = math.exp %31 : vector<128x1xf32>
      %33 = vector.broadcast %29 : vector<128x1xf32> to vector<128x256xf32>
      %34 = arith.subf %25, %33 : vector<128x256xf32>
      %35 = math.exp %34 : vector<128x256xf32>
      %36 = arith.truncf %35 : vector<128x256xf32> to vector<128x256xbf16>
      %37 = arith.mulf %36, %13 : vector<128x256xbf16>
      %c0_16 = arith.constant 0 : index
      %c0_17 = arith.constant 0 : index
      %38 = vector.load %arg9[%c0_16, %c0_17] : memref<128x128xf32, #tpu.memory_space<vmem>>, vector<128x128xf32>
      %39 = vector.broadcast %32 : vector<128x1xf32> to vector<128x128xf32>
      %40 = arith.mulf %39, %38 : vector<128x128xf32>
      %c0_18 = arith.constant 0 : index
      %c0_19 = arith.constant 0 : index
      %41 = vector.load %arg5[%c0_18, %c0_19] : memref<256x128xbf16, #tpu.memory_space<vmem>>, vector<256x128xbf16>
      %cst_20 = arith.constant dense<0.000000e+00> : vector<128x128xf32>
      %42 = tpu.matmul %37, %41, %cst_20 {dimension_numbers = #tpu.dot_dimension_numbers<[1], [0], [0], [1], [0, 0, 1, 1], [], []>} : vector<128x256xbf16>, vector<256x128xbf16>, vector<128x128xf32> -> vector<128x128xf32>
      %43 = arith.addf %40, %42 : vector<128x128xf32>
      %c0_21 = arith.constant 0 : index
      %c0_22 = arith.constant 0 : index
      %44 = vector.load %arg9[%c0_21, %c0_22] : memref<128x128xf32, #tpu.memory_space<vmem>>, vector<128x128xf32>
      tpu.vector_store %arg9[%c0_21, %c0_22], %43 {strides = array<i32>} : memref<128x128xf32, #tpu.memory_space<vmem>>, vector<128x128xf32>,
      %c0_23 = arith.constant 0 : index
      %c0_24 = arith.constant 0 : index
      %45 = vector.load %arg8[%c0_23, %c0_24] : memref<128x1xf32, #tpu.memory_space<vmem>>, vector<128x1xf32>
      tpu.vector_store %arg8[%c0_23, %c0_24], %29 {strides = array<i32>} : memref<128x1xf32, #tpu.memory_space<vmem>>, vector<128x1xf32>,
    } else {
    }
    %c0_i32_3 = arith.constant 0 : i32
    %10 = arith.cmpi eq, %arg1, %c0_i32_3 : i32
    %11 = arith.extui %10 : i1 to i32
    %c0_i32_4 = arith.constant 0 : i32
    %12 = arith.cmpi ne, %11, %c0_i32_4 : i32
    scf.if %12 {
      %c0 = arith.constant 0 : index
      %c32 = arith.constant 32 : index
      %13 = vector.load %arg9[%c0, %c32] : memref<128x128xf32, #tpu.memory_space<vmem>>, vector<128x1xf32>
      %14 = tpu.reciprocal %13 {approx = true} : vector<128x1xf32> -> vector<128x1xf32>
      %cst = arith.constant 0.000000e+00 : f32
      %15 = vector.broadcast %cst : f32 to vector<128x1xf32>
      %16 = arith.cmpf ogt, %13, %15 : vector<128x1xf32>
      %cst_5 = arith.constant 0.000000e+00 : f32
      %17 = vector.broadcast %cst_5 : f32 to vector<128x1xf32>
      %18 = arith.select %16, %14, %17 : vector<128x1xi1>, vector<128x1xf32>
      %c0_6 = arith.constant 0 : index
      %c0_7 = arith.constant 0 : index
      %19 = vector.load %arg9[%c0_6, %c0_7] : memref<128x128xf32, #tpu.memory_space<vmem>>, vector<128x128xf32>
      %20 = vector.broadcast %18 : vector<128x1xf32> to vector<128x128xf32>
      %21 = arith.mulf %19, %20 : vector<128x128xf32>
      %c0_8 = arith.constant 0 : index
      %c0_9 = arith.constant 0 : index
      %22 = vector.load %arg6[%c0_8, %c0_9] : memref<128x128xf32, #tpu.memory_space<vmem>>, vector<128x128xf32>
      %23 = arith.addf %21, %22 : vector<128x128xf32>
      %c0_10 = arith.constant 0 : index
      %c0_11 = arith.constant 0 : index
      %24 = vector.load %arg7[%c0_10, %c0_11] : memref<128x128xf32, #tpu.memory_space<vmem>>, vector<128x128xf32>
      tpu.vector_store %arg7[%c0_10, %c0_11], %23 {strides = array<i32>} : memref<128x128xf32, #tpu.memory_space<vmem>>, vector<128x128xf32>,
    } else {
    }
    return
  }
  func.func @transform_0(%arg0: i32, %arg1: i32, %arg2: memref<2xi32, #tpu.memory_space<smem>>) -> (i32, i32) {
    %c0_i32 = arith.constant 0 : i32
    %c0_i32_0 = arith.constant 0 : i32
    return %c0_i32, %arg1 : i32, i32
  }
  func.func @transform_1(%arg0: i32, %arg1: i32, %arg2: memref<2xi32, #tpu.memory_space<smem>>) -> (i32, i32) {
    %c0_i32 = arith.constant 0 : i32
    return %arg0, %arg1 : i32, i32
  }
  func.func @transform_2(%arg0: i32, %arg1: i32, %arg2: memref<2xi32, #tpu.memory_space<smem>>) -> (i32, i32) {
    %c0_i32 = arith.constant 0 : i32
    %c0_i32_0 = arith.constant 0 : i32
    return %arg1, %c0_i32 : i32, i32
  }
  func.func @transform_3(%arg0: i32, %arg1: i32, %arg2: memref<2xi32, #tpu.memory_space<smem>>) -> (i32, i32) {
    %c0_i32 = arith.constant 0 : i32
    %c0_i32_0 = arith.constant 0 : i32
    return %arg0, %c0_i32 : i32, i32
  }
  func.func @transform_4(%arg0: i32, %arg1: i32, %arg2: memref<2xi32, #tpu.memory_space<smem>>) -> (i32, i32) {
    %c0_i32 = arith.constant 0 : i32
    %c0_i32_0 = arith.constant 0 : i32
    return %arg0, %c0_i32 : i32, i32
  }
}

</mosaic_0001>

<bundles_post_ra>
// kernel: tpu_custom_call.1
= control target key start
LH: loop header
LB: loop body
LE: loop exit
PB: predicated region body
PF: predicated region fallthrough
CT: control target
= control target key end

     0   :  { %s3675_s0 = inlined_call_operand.hbm [shape: s32[2], index: 0, kind: input, shape index: {}]   ;;  %s3676_s1 = inlined_call_operand.vmem [shape: f32[1,256], index: 1, kind: input, shape index: {}]   ;;  %s3677_s2 = inlined_call_operand.hbm [shape: bf16[256,256], index: 2, kind: input, shape index: {}]   ;;  %s3678_s3 = inlined_call_operand.hbm [shape: bf16[256,128], index: 3, kind: input, shape index: {}]   ;;  %s3679_s4 = inlined_call_operand.hbm [shape: f32[256,128], index: 4, kind: input, shape index: {}]   ;;  %s3680_s5 = inlined_call_operand.hbm [shape: f32[256,128], index: 5, kind: output, shape index: {}]  }
   0x1   :  { %s2267_s20 = scalar_lea.hbm %s3675_s0, 16 }
   0x2   :  { %p2268_p0 = scmp.ne.s32.totalorder %s3675_s0, %s2267_s20  ;;  %p2271_p1 = scmp.lt.u32.totalorder %s2267_s20, %s3675_s0 }
   0x4   :  { %p2273_p2 = pnand %p2271_p1, %p2268_p0 }
   0x6   :  { %2276 = shalt.err (!%p2273_p2)  }
   0x7   :  { %s2459_s25 = smov [#allocation5]  }
   0x8   :  { %11 = dma.hbm_to_smem %s3675_s0, 16, %s2459_s25, [#allocation4] }
   0x9   :  { %2417 = dma.done.wait [#allocation4], 16 }
   0xa   :  { %2418 = vsyncadd [#allocation4], 4294967280 }
   0xb   :  { %13 = sfence }
   0xc   :  { %14 = vsyncpa [#allocation7], 0 }
   0xd   :  { %16 = vsyncpa [#allocation7 + $0x1], 0 }
   0xe   :  { %17 = vsyncpa [#allocation10], 0 }
   0xf   :  { %18 = vsyncpa [#allocation8], 0 }
  0x10   :  { %20 = vsyncpa [#allocation8 + $0x1], 0  ;;  %s2517_s28 = smov 0   ;;  %s2519_s29 = smov 0  }
  0x11   :  { %s2521_s30 = smov 0   ;;  %s2523_s6 = smov 0  }
  0x12   :  { %s2525_s7 = smov 0   ;;  %s2527_s8 = smov 0  }
  0x13 LB: > { %s38_s0 = sadd.s32 1, %s2453_s7  ;;  %s73_s9 = sadd.s32 1, %s2445_s30  ;;  %s2457_s8 = sphi %s2527_s8, %s26_s8   ;;  %s2453_s7 = sphi %s2525_s7, %s3774_s7   ;;  %s2449_s6 = sphi %s2523_s6, %s3773_s6   ;;  %s2445_s30 = sphi %s2521_s30, %s3772_s30   ;;  %s2441_s29 = sphi %s2519_s29, %s3771_s29   ;;  %s2437_s28 = sphi %s2517_s28, %s3770_s28  }
  0x14   : > { %p40_p3 = scmp.ge.s32.totalorder %s38_s0, 2  ;;  %p80_p4 = scmp.ne.s32.totalorder %s2445_s30, %s2441_s29 }
  0x15   : > { %p81_p5 = scmp.eq.s32.totalorder %s2457_s8, 0  ;;  %p2037_p8 = scmp.lt.s32.totalorder %s2457_s8, 2 }
  0x16   : > { %s3776_s0 = smov (%p40_p3, %s38_s0), 0  ;;  %s212_s11 = sand.u32 1, %s2457_s8  }
  0x17   : > { %p82_p7 = por %p81_p5, %p80_p4  ;;  %s68_s10 = ssub.s32 %s2453_s7, %s3776_s0 }
  0x18   : > { %p71_p9 = scmp.eq.s32.totalorder %s68_s10, 0  ;;  %s214_s12 = sand.u32 1, %s2445_s30  }
  0x19   : > { %s1928_s13 = sshll.u32 %s2453_s7, 11  ;;  %s2567_s15 = sshll.u32 %s214_s12, 7 }
  0x1a   : > { %s2565_s14 = scalar_select %p71_p9, %s2445_s30, %s73_s9  }
  0x1b   : > { %s2574_s18 = scalar_lea.hbm %s3677_s2, %s1928_s13  ;;  %p2576_p10 = pnand %p2037_p8, %p82_p7 }
  0x1c   : > { %s216_s20 = scalar_lea.vmem [#allocation6], %s2567_s15  ;;  %s2583_s22 = scalar_lea.sflag [#allocation7], %s212_s11 }
  0x1d   : > { %s226_s21 = sshll.u32 %s216_s20, 4  ;;  %s2277_s23 = scalar_lea.hbm %s2574_s18, 2048  ;;  %s2581_s21 = int_to_ptr.vmem [resolvable:$true] %s226_s21 }
  0x1e   : > { %p2278_p11 = scmp.ne.s32.totalorder %s2574_s18, %s2277_s23  ;;  %p2279_p12 = pneg %p2576_p10 }
  0x1f   : > { %s2282_s26 = scalar_lea.hbm %s3677_s2, 4096  ;;  %p2283_p1 = scmp.lt.u32.totalorder %s2574_s18, %s3677_s2 }
  0x20   : > { %p2280_p13 = pnand %p2279_p12, %p2278_p11  ;;  %p2284_p2 = scmp.lt.u32.totalorder %s2282_s26, %s2277_s23 }
  0x21   : > { %p2286_p5 = scmp.lt.u32.totalorder %s2277_s23, %s2574_s18 }
  0x22   : > { %p2281_p0 = pneg %p2280_p13  ;;  %p2285_p3 = por %p2284_p2, %p2283_p1 }
  0x24   : > { %p2287_p7 = por %p2286_p5, %p2285_p3 }
  0x26   : > { %p2288_p8 = pnand %p2287_p7, %p2281_p0 }
  0x28   : > { %2291 = shalt.err (!%p2288_p8)
}
  0x29   : > { %s2292_s10 = scalar_lea.vmem %s2581_s21, 2048  ;;  %s2460_s11 = smov [#allocation6]  }
  0x2a   : > { %p2293_p9 = scmp.ne.s32.totalorder %s2581_s21, %s2292_s10  ;;  %s2297_s12 = sshll.u32 %s2460_s11, 4  ;;  %s2298_s12 = int_to_ptr.vmem [resolvable:$false] %s2297_s12 }
  0x2b   : > { %s2299_s16 = scalar_lea.vmem %s2298_s12, 4096  ;;  %p2300_p6 = scmp.lt.s32.totalorder %s2581_s21, %s2298_s12 }
  0x2c   : > { %p2295_p11 = pnand %p2293_p9, %p2279_p12  ;;  %p2301_p1 = scmp.lt.s32.totalorder %s2299_s16, %s2292_s10 }
  0x2e   : > { %p2296_p13 = pneg %p2295_p11  ;;  %p2302_p2 = por %p2301_p1, %p2300_p6 }
  0x30   : > { %p2303_p3 = pnand %p2302_p2, %p2296_p13 }
  0x32   : > { %2306 = shalt.err (!%p2303_p3)
}
  0x33   : > { %s3681_s17 = smov 128   ;;  %s2462_s20 = smov 8  }
  0x34   : > { %2028 = dma.hbm_to_vmem [thread:$0]  (!%p2576_p10), %s2574_s18, 2048, %s2581_s21, %s2583_s22, %s3681_s17, %s3681_s17, %s2462_s20  }
  0x35   : > { %s2619_s25 = scalar_lea.hbm %s3679_s4, %s1928_s13  ;;  %s240_s26 = scalar_lea.vmem [#allocation11], %s2567_s15 }
  0x36   : > { %s247_s27 = sshll.u32 %s240_s26, 4  ;;  %s2625_s9 = sadd.s32 4294967295, %s2457_s8   ;;  %s2622_s27 = int_to_ptr.vmem [resolvable:$true] %s247_s27 }
  0x37   : > { %s1872_s10 = sadd.s32 4294967294, %s2457_s8   ;;  %p86_p6 = scmp.ne.s32.totalorder %s2441_s29, %s2437_s28 }
  0x38   : > { %p3682_p0 = scmp.eq.s32.totalorder %s2625_s9, 0  ;;  %p162_p5 = scmp.eq.s32.totalorder %s2625_s9, 1 }
  0x39   : > { %p168_p7 = scmp.eq.s32.totalorder %s1872_s10, 1  ;;  %p1873_p8 = scmp.ge.s32.totalorder %s2457_s8, 1 }
  0x3a   : > { %p2635_p9 = por %p3682_p0, %p86_p6  ;;  %p2642_p11 = por %p162_p5, %p80_p4 }
  0x3b   : > { %p2646_p13 = por %p168_p7, %p86_p6  ;;  %p175_p1 = scmp.lt.s32.totalorder %s2457_s8, 3 }
  0x3c   : > { %s3689_s13 = scalar_select %p2635_p9, 1, 0 }
  0x3d   : > { %s3690_s15 = scalar_select %p2642_p11, 1, 0 }
  0x3e   : > { %s3691_s18 = scalar_select %p2646_p13, 1, 0 }
  0x3f   : > { %p2651_p2 = pnand %p1873_p8, %p175_p1  ;;  %s2463_s11 = smov [#allocation9]  }
  0x40   : > { %s198_s12 = sshll.u32 %s2463_s11, 4  ;;  %s2307_s16 = scalar_lea.hbm %s2619_s25, 2048  ;;  %s2655_s12 = int_to_ptr.vmem [resolvable:$true] %s198_s12 }
  0x41   : > { %s3692_s21 = scalar_select %p2651_p2, 1, 0 }
  0x42   : > { %p2308_p3 = scmp.ne.s32.totalorder %s2619_s25, %s2307_s16  ;;  %s2312_s26 = scalar_lea.hbm %s3679_s4, 4096 }
  0x43   : > { %p2313_p7 = scmp.lt.u32.totalorder %s2619_s25, %s3679_s4  ;;  %p2314_p8 = scmp.lt.u32.totalorder %s2312_s26, %s2307_s16 }
  0x44   : > { %p2310_p6 = pnand %p2308_p3, %p2279_p12  ;;  %p2316_p0 = scmp.lt.u32.totalorder %s2307_s16, %s2619_s25 }
  0x45   : > { %p2315_p1 = por %p2314_p8, %p2313_p7 }
  0x46   : > { %p2311_p5 = pneg %p2310_p6 }
  0x47   : > { %p2317_p13 = por %p2316_p0, %p2315_p1 }
  0x49   : > { %p2318_p11 = pnand %p2317_p13, %p2311_p5 }
  0x4b   : > { %2321 = shalt.err (!%p2318_p11)
}
  0x4c   : > { %s2322_s11 = scalar_lea.vmem %s2622_s27, 2048  ;;  %s2464_s23 = smov [#allocation11]  }
  0x4d   : > { %p2323_p3 = scmp.ne.s32.totalorder %s2622_s27, %s2322_s11  ;;  %s2327_s24 = sshll.u32 %s2464_s23, 4  ;;  %s2328_s24 = int_to_ptr.vmem [resolvable:$false] %s2327_s24 }
  0x4e   : > { %s2329_s17 = scalar_lea.vmem %s2328_s24, 4096  ;;  %p2330_p9 = scmp.lt.s32.totalorder %s2622_s27, %s2328_s24 }
  0x4f   : > { %p2325_p6 = pnand %p2323_p3, %p2279_p12  ;;  %p2331_p7 = scmp.lt.s32.totalorder %s2329_s17, %s2322_s11 }
  0x51   : > { %p2326_p4 = pneg %p2325_p6  ;;  %p2332_p8 = por %p2331_p7, %p2330_p9 }
  0x53   : > { %p2333_p0 = pnand %p2332_p8, %p2326_p4 }
  0x55   : > { %2336 = shalt.err (!%p2333_p0)
}
  0x56   : > { %s3693_s16 = smov 128   ;;  %p3694_p12 = scmp.eq.s32.totalorder %s2625_s9, 0 }
  0x57   : > { %2031 = dma.hbm_to_vmem [thread:$0]  (!%p2576_p10), %s2619_s25, 2048, %s2622_s27, %s2583_s22, %s3693_s16, %s3693_s16, %s2462_s20  }
  0x58   : > { %p3695_p11 = pneg %p2651_p2  ;;  %s2337_s19 = scalar_lea.hbm %s3678_s3, 2048 }
  0x59   : > { %p2338_p9 = scmp.ne.s32.totalorder %s3678_s3, %s2337_s19  ;;  %p2344_p1 = scmp.lt.u32.totalorder %s2337_s19, %s3678_s3 }
  0x5a   : > { %p2691_p13 = pnand %p3695_p11, %p3694_p12 }
  0x5c   : > { %p2339_p4 = pneg %p2691_p13 }
  0x5e   : > { %p2340_p5 = pnand %p2339_p4, %p2338_p9 }
  0x60   : > { %p2341_p10 = pneg %p2340_p5 }
  0x62   : > { %p2346_p3 = pnand %p2344_p1, %p2341_p10 }
  0x64   : > { %2349 = shalt.err (!%p2346_p3)
}
  0x65   : > { %s2350_s25 = scalar_lea.vmem %s2655_s12, 2048  ;;  %p2358_p0 = scmp.lt.s32.totalorder %s2655_s12, %s2655_s12 }
  0x66   : > { %p2351_p6 = scmp.ne.s32.totalorder %s2655_s12, %s2350_s25  ;;  %p2359_p12 = scmp.lt.s32.totalorder %s2350_s25, %s2350_s25 }
  0x68   : > { %p2353_p7 = pnand %p2351_p6, %p2339_p4  ;;  %p2360_p11 = por %p2359_p12, %p2358_p0 }
  0x6a   : > { %p2354_p8 = pneg %p2353_p7 }
  0x6c   : > { %p2361_p2 = pnand %p2360_p11, %p2354_p8 }
  0x6e   : > { %2364 = shalt.err (!%p2361_p2)
}
  0x6f   : > { %s2465_s27 = smov 64   ;;  %s2466_s17 = smov 4  }
  0x70   : > { %2024 = dma.hbm_to_vmem [thread:$0]  (!%p2691_p13), %s3678_s3, 2048, %s2655_s12, [#allocation10], %s2465_s27, %s2465_s27, %s2466_s17  }
  0x71   : > { %p3697_p9 = scmp.ne.s32.totalorder %s3692_s21, 0 }
  0x72   : > { %s261_s11 = sand.u32 (!%p3697_p9), 1, %s2625_s9   ;;  %s263_s19 = sand.u32 (!%p3697_p9), 1, %s2441_s29  }
  0x73   : > { %259 = sbr.rel (%p3697_p9) target bundleno = 1038 (0x40e), region = 36  ;;  %s2722_s23 = sshll.u32 (!%p3697_p9), %s263_s19, 7 }
  0x74   : > { %s262_s24 = scalar_lea.sflag (!%p3697_p9), [#allocation7], %s261_s11  ;;  %s2725_s22 = scalar_lea.vmem (!%p3697_p9), [#allocation6], %s2722_s23 }
  0x75   : > { %p3698_p2 = scmp.ne.s32.totalorder (!%p3697_p9), %s3689_s13, 0 }
  0x7a   : > { %2420 = dma.done.wait (%p3698_p2), %s262_s24, 2048  }
  0x7b   : > { %2422 = vsyncadd (%p3698_p2), %s262_s24, 4294965248  ;;  %p3699_p13 = scmp.eq.s32.totalorder %s2625_s9, 0 }
  0x7d   : > { %2424 = dma.done.wait (%p3699_p13), [#allocation10], 2048   ;;  %p3700_p4 = pmov %p3699_p13 }
  0x7e   : > { %s2736_s21 = scalar_lea.vmem [#allocation11], %s2722_s23 }
  0x7f   : > { %2426 = vsyncadd (%p3700_p4), [#allocation10], 4294965248 }
  0x80   : > { %2428 = dma.done.wait (%p3698_p2), %s262_s24, 2048  }
  0x81   : > { %2430 = vsyncadd (%p3698_p2), %s262_s24, 4294965248  ;;  %vm329_vm0 = vcmask 7168   ;;  %s2743_s12 = sld [smem:[#allocation5 + %s2449_s6]]  ;;  %v2467_v0 = vmov -1e+30   ;;  %v2468_v1 = vmov 0.0  }
  0x82   : > { %330 = vst.msk [vmem:[#allocation2] sm:$0xff] %vm329_vm0, %v2467_v0  ;;  %331 = vst.msk [vmem:[#allocation2 + $0x8] sm:$0xff] %vm329_vm0, %v2467_v0  ;;  %s2762_s9 = scalar_lea.vmem [#allocation12], %s2722_s23 }
  0x83   : > { %332 = vst.msk [vmem:[#allocation2 + $0x10] sm:$0xff] %vm329_vm0, %v2467_v0  ;;  %333 = vst.msk [vmem:[#allocation2 + $0x18] sm:$0xff] %vm329_vm0, %v2467_v0 }
  0x84   : > { %334 = vst.msk [vmem:[#allocation2 + $0x20] sm:$0xff] %vm329_vm0, %v2467_v0  ;;  %335 = vst.msk [vmem:[#allocation2 + $0x28] sm:$0xff] %vm329_vm0, %v2467_v0 }
  0x85   : > { %336 = vst.msk [vmem:[#allocation2 + $0x30] sm:$0xff] %vm329_vm0, %v2467_v0  ;;  %337 = vst.msk [vmem:[#allocation2 + $0x38] sm:$0xff] %vm329_vm0, %v2467_v0 }
  0x86   : > { %338 = vst.msk [vmem:[#allocation2 + $0x40] sm:$0xff] %vm329_vm0, %v2467_v0  ;;  %339 = vst.msk [vmem:[#allocation2 + $0x48] sm:$0xff] %vm329_vm0, %v2467_v0 }
  0x87   : > { %340 = vst.msk [vmem:[#allocation2 + $0x50] sm:$0xff] %vm329_vm0, %v2467_v0  ;;  %341 = vst.msk [vmem:[#allocation2 + $0x58] sm:$0xff] %vm329_vm0, %v2467_v0  ;;  %p1889_p5 = scmp.eq.s32.totalorder %s2743_s12, 0 }
  0x88   : > { %342 = vst.msk [vmem:[#allocation2 + $0x60] sm:$0xff] %vm329_vm0, %v2467_v0  ;;  %343 = vst.msk [vmem:[#allocation2 + $0x68] sm:$0xff] %vm329_vm0, %v2467_v0 }
  0x89   : > { %344 = vst.msk [vmem:[#allocation2 + $0x70] sm:$0xff] %vm329_vm0, %v2467_v0  ;;  %345 = vst.msk [vmem:[#allocation2 + $0x78] sm:$0xff] %vm329_vm0, %v2467_v0 }
  0x8a   : > { %346 = vst [vmem:[#allocation3] sm:$0xff] %v2468_v1  ;;  %347 = vst [vmem:[#allocation3 + $0x8] sm:$0xff] %v2468_v1 }
  0x8b   : > { %348 = vst [vmem:[#allocation3 + $0x10] sm:$0xff] %v2468_v1  ;;  %349 = vst [vmem:[#allocation3 + $0x18] sm:$0xff] %v2468_v1  ;;  %367 = sbr.rel (%p1889_p5) target bundleno = 849 (0x351), region = 56 }
  0x8c   : > { %350 = vst [vmem:[#allocation3 + $0x20] sm:$0xff] %v2468_v1  ;;  %351 = vst [vmem:[#allocation3 + $0x28] sm:$0xff] %v2468_v1 }
  0x8d   : > { %352 = vst [vmem:[#allocation3 + $0x30] sm:$0xff] %v2468_v1  ;;  %353 = vst [vmem:[#allocation3 + $0x38] sm:$0xff] %v2468_v1 }
  0x8e   : > { %354 = vst [vmem:[#allocation3 + $0x40] sm:$0xff] %v2468_v1  ;;  %355 = vst [vmem:[#allocation3 + $0x48] sm:$0xff] %v2468_v1 }
  0x8f   : > { %356 = vst [vmem:[#allocation3 + $0x50] sm:$0xff] %v2468_v1  ;;  %357 = vst [vmem:[#allocation3 + $0x58] sm:$0xff] %v2468_v1 }
  0x90   : > { %358 = vst [vmem:[#allocation3 + $0x60] sm:$0xff] %v2468_v1  ;;  %359 = vst [vmem:[#allocation3 + $0x68] sm:$0xff] %v2468_v1 }
  0x91   : > { %360 = vst [vmem:[#allocation3 + $0x70] sm:$0xff] %v2468_v1  ;;  %361 = vst [vmem:[#allocation3 + $0x78] sm:$0xff] %v2468_v1 }
  0x92   : > { %v392_v2 = vld [vmem:[%s2736_s21 + $0x40] sm:$0xff]  ;;  %v2469_v4 = vmov 32   ;;  %v393_v5 = vld [vmem:[%s2736_s21 + $0x48] sm:$0xff]  ;;  %v387_v7 = vld [vmem:[%s2736_s21 + $0x18] sm:$0xff]  ;;  %v2470_v19 = vmov 0   ;;  %v482_v20 = vlaneseq }
  0x93   : > { %v384_v3 = vld [vmem:[%s2736_s21] sm:$0xff]  ;;  %2102 = vset.pattern.permute.xlu1 %v2469_v4  ;;  %2101 = vset.pattern.permute.xlu0 %v2469_v4  ;;  %v385_v6 = vld [vmem:[%s2736_s21 + $0x8] sm:$0xff]  ;;  %v386_v8 = vld [vmem:[%s2736_s21 + $0x10] sm:$0xff] }
  0x94   : > { %443 = vperm.xlu1 %2102, %v392_v2   ;;  %403 = vperm.xlu0 %2101, %v384_v3   ;;  %v395_v9 = vld [vmem:[%s2736_s21 + $0x58] sm:$0xff]  ;;  %v394_v10 = vld [vmem:[%s2736_s21 + $0x50] sm:$0xff]  ;;  %v389_v11 = vld [vmem:[%s2736_s21 + $0x28] sm:$0xff]  ;;  %v483_v21 = vshrl.u32 %v482_v20, 7 }
  0x95   : > { %v388_v12 = vld [vmem:[%s2736_s21 + $0x20] sm:$0xff]  ;;  %v397_v13 = vld [vmem:[%s2736_s21 + $0x68] sm:$0xff]  ;;  %v391_v15 = vld [vmem:[%s2736_s21 + $0x38] sm:$0xff] }
  0x96   : > { %v396_v14 = vld [vmem:[%s2736_s21 + $0x60] sm:$0xff]  ;;  %v390_v16 = vld [vmem:[%s2736_s21 + $0x30] sm:$0xff]  ;;  %v399_v17 = vld [vmem:[%s2736_s21 + $0x78] sm:$0xff]  ;;  %v484_v25 = vsub.s32 0, %v483_v21  ;;  %v488_v28 = vsub.s32 1, %v483_v21 }
  0x97   : > { %v398_v18 = vld [vmem:[%s2736_s21 + $0x70] sm:$0xff]  ;;  %v368_v22 = vld [vmem:[%s2725_s22] sm:$0xff]  ;;  %v369_v24 = vld [vmem:[%s2725_s22 + $0x8] sm:$0xff] }
  0x98   : > { %448 = vperm.xlu1 %2102, %v393_v5   ;;  %408 = vperm.xlu0 %2101, %v385_v6   ;;  %v376_v23 = vld [vmem:[%s2725_s22 + $0x40] sm:$0xff]  ;;  %vm588_vm1 = vcmp.ne.bf16.partialorder %v368_v22, 0  ;;  %v377_v26 = vld [vmem:[%s2725_s22 + $0x48] sm:$0xff]  ;;  %v400_v27 = vld [vmem:[%s3676_s1] sm:$0x3]  ;;  %vm589_vm3 = vcmp.ne.bf16.partialorder %v369_v24, 0 }
  0x99   : > { %vm596_vm2 = vcmp.ne.bf16.partialorder %v376_v23, 0  ;;  %v370_v29 = vld [vmem:[%s2725_s22 + $0x10] sm:$0xff]  ;;  %v604_v30 = vsel %vm588_vm1, 65537, %v2470_v19  ;;  %v371_v31 = vld [vmem:[%s2725_s22 + $0x18] sm:$0xff]  ;;  %vm597_vm4 = vcmp.ne.bf16.partialorder %v377_v26, 0  ;;  %v2795_v34 = vrot.slane %v400_v27, %v484_v25  ;;  %v372_v36 = vld [vmem:[%s2725_s22 + $0x20] sm:$0xff] }
  0x9a   : > { %v378_v32 = vld [vmem:[%s2725_s22 + $0x50] sm:$0xff]  ;;  %v379_v33 = vld [vmem:[%s2725_s22 + $0x58] sm:$0xff]  ;;  %v2798_v35 = vsel %vm596_vm2, 65537, %v2470_v19  ;;  %vm590_vm5 = vcmp.ne.bf16.partialorder %v370_v29, 0  ;;  %v2801_v37 = vrot.slane %v400_v27, %v488_v28  ;;  %v620_v38 = vunpack.c.l.b16 %v604_v30  ;;  %v373_v40 = vld [vmem:[%s2725_s22 + $0x28] sm:$0xff] }
  0x9b   : > { %v2804_v39 = vsel %vm589_vm3, 65537, %v2470_v19  ;;  %vm591_vm6 = vcmp.ne.bf16.partialorder %v371_v31, 0  ;;  %v621_v41 = vunpack.c.h.b16 %v604_v30  ;;  %v2808_v42 = vsel %vm597_vm4, 65537, %v2470_v19  ;;  %v380_v46 = vld [vmem:[%s2725_s22 + $0x60] sm:$0xff]  ;;  %v374_v50 = vld [vmem:[%s2725_s22 + $0x30] sm:$0xff]  ;;  %v381_v51 = vld [vmem:[%s2725_s22 + $0x68] sm:$0xff] }
  0x9c   : > { %418 = vperm.xlu1 %2102, %v387_v7   ;;  %413 = vperm.xlu0 %2101, %v386_v8   ;;  %vm598_vm7 = vcmp.ne.bf16.partialorder %v378_v32, 0  ;;  %vm599_vm8 = vcmp.ne.bf16.partialorder %v379_v33, 0  ;;  %v636_v43 = vunpack.c.l.b16 %v2798_v35  ;;  %v637_v44 = vunpack.c.h.b16 %v2798_v35  ;;  %v375_v59 = vld [vmem:[%s2725_s22 + $0x38] sm:$0xff]  ;;  %v382_v2 = vld [vmem:[%s2725_s22 + $0x70] sm:$0xff] }
  0x9d   : > { %v2813_v45 = vsel %vm590_vm5, 65537, %v2470_v19  ;;  %vm592_vm9 = vcmp.ne.bf16.partialorder %v372_v36, 0  ;;  %v622_v47 = vunpack.c.l.b16 %v2804_v39  ;;  %v623_v48 = vunpack.c.h.b16 %v2804_v39 }
  0x9e   : > { %v2819_v49 = vsel %vm591_vm6, 65537, %v2470_v19  ;;  %vm593_vm10 = vcmp.ne.bf16.partialorder %v373_v40, 0  ;;  %v638_v52 = vunpack.c.l.b16 %v2808_v42  ;;  %v639_v53 = vunpack.c.h.b16 %v2808_v42 }
  0x9f   : > { %v2826_v54 = vsel %vm598_vm7, 65537, %v2470_v19  ;;  %v2829_v55 = vsel %vm599_vm8, 65537, %v2470_v19  ;;  %v624_v56 = vunpack.c.l.b16 %v2813_v45  ;;  %v625_v57 = vunpack.c.h.b16 %v2813_v45 }
  0xa0   : > { %458 = vperm.xlu1 %2102, %v395_v9   ;;  %453 = vperm.xlu0 %2101, %v394_v10   ;;  %v2834_v58 = vsel %vm592_vm9, 65537, %v2470_v19  ;;  %vm600_vm11 = vcmp.ne.bf16.partialorder %v380_v46, 0  ;;  %v626_v60 = vunpack.c.l.b16 %v2819_v49  ;;  %v2839_v61 = vsel %vm593_vm10, 65537, %v2470_v19 }
  0xa1   : > { %vm594_vm12 = vcmp.ne.bf16.partialorder %v374_v50, 0  ;;  %vm601_vm13 = vcmp.ne.bf16.partialorder %v381_v51, 0  ;;  %v640_v62 = vunpack.c.l.b16 %v2826_v54  ;;  %v641_v63 = vunpack.c.h.b16 %v2826_v54 }
  0xa2   : > { %v627_v0 = vunpack.c.h.b16 %v2819_v49  ;;  %v642_v1 = vunpack.c.l.b16 %v2829_v55  ;;  %vm2846_vm14 = vcmp.ne.s32.totalorder %v620_v38, 0  ;;  %v628_v4 = vunpack.c.l.b16 %v2834_v58  ;;  %v383_v38 = vld [vmem:[%s2725_s22 + $0x78] sm:$0xff] }
  0xa3   : > { %v643_v5 = vunpack.c.h.b16 %v2829_v55  ;;  %v2853_v6 = vsel %vm600_vm11, 65537, %v2470_v19  ;;  %vm595_vm15 = vcmp.ne.bf16.partialorder %v375_v59, 0  ;;  %v629_v9 = vunpack.c.h.b16 %v2834_v58 }
  0xa4   : > { %428 = vperm.xlu1 %2102, %v389_v11   ;;  %423 = vperm.xlu0 %2101, %v388_v12   ;;  %v630_v10 = vunpack.c.l.b16 %v2839_v61  ;;  %v2859_v11 = vsel %vm594_vm12, 65537, %v2470_v19  ;;  %v2863_v12 = vsel %vm601_vm13, 65537, %v2470_v19  ;;  %vm2870_vm1 = vcmp.ne.s32.totalorder %v621_v41, 0 }
  0xa5   : > { %vm2874_vm2 = vcmp.ne.s32.totalorder %v636_v43, 0  ;;  %vm602_vm3 = vcmp.ne.bf16.partialorder %v382_v2, 0  ;;  %vm2878_vm4 = vcmp.ne.s32.totalorder %v622_v47, 0  ;;  %v644_v20 = vunpack.c.l.b16 %v2853_v6 }
  0xa6   : > { %v645_v21 = vunpack.c.h.b16 %v2853_v6  ;;  %v631_v22 = vunpack.c.h.b16 %v2839_v61  ;;  %v2887_v23 = vsel %vm595_vm15, 65537, %v2470_v19  ;;  %vm2894_vm5 = vcmp.ne.s32.totalorder %v623_v48, 0 }
  0xa7   : > { %vm2898_vm6 = vcmp.ne.s32.totalorder %v637_v44, 0  ;;  %v632_v33 = vunpack.c.l.b16 %v2859_v11  ;;  %v2906_v36 = vsel %vm602_vm3, 65537, %v2470_v19  ;;  %vm2922_vm7 = vcmp.ne.s32.totalorder %v624_v56, 0 }
  0xa8   : > { %468 = vperm.xlu1 %2102, %v397_v13   ;;  %463 = vperm.xlu0 %2101, %v396_v14   ;;  %vm603_vm8 = vcmp.ne.bf16.partialorder %v383_v38, 0  ;;  %vm2939_vm9 = vcmp.ne.s32.totalorder %v625_v57, 0  ;;  %vm2945_vm10 = vcmp.ne.s32.totalorder %v638_v52, 0  ;;  %vm2965_vm11 = vcmp.ne.s32.totalorder %v639_v53, 0 }
  0xa9   : > { %v2957_v45 = vsel %vm603_vm8, 65537, %v2470_v19  ;;  %vm2992_vm12 = vcmp.ne.s32.totalorder %v640_v62, 0  ;;  %vm3005_vm13 = vcmp.ne.s32.totalorder %v641_v63, 0  ;;  %vm3034_vm15 = vcmp.ne.s32.totalorder %v627_v0, 0 }
  0xaa   : > { %vm3089_vm3 = vcmp.ne.s32.totalorder %v642_v1, 0  ;;  %vm3142_vm8 = vcmp.ne.s32.totalorder %v631_v22, 0 }
  0xac   : > { %438 = vperm.xlu1 %2102, %v391_v15   ;;  %433 = vperm.xlu0 %2101, %v390_v16  }
  0xb0   : > { %478 = vperm.xlu1 %2102, %v399_v17   ;;  %473 = vperm.xlu0 %2101, %v398_v18   ;;  %v650_v18 = vunpack.c.l.b16 %v2957_v45 }
  0xb4   : > { %2103 = vset.pattern.permute.xlu1 %v2470_v19  ;;  %2104 = vset.pattern.permute.xlu0 %v2470_v19 }
 0x113   : > { %v444_v7 = vpop.permute.xlu1 %443  ;;  %v404_v8 = vpop.permute.xlu0 %403 }
 0x114   : > { %v2866_v13 = vadd.f32 %v2795_v34, %v444_v7  ;;  %v492_v14 = vadd.f32 %v2795_v34, %v404_v8  ;;  %v493_v15 = vadd.f32 %v2801_v37, %v404_v8  ;;  %v2890_v24 = vadd.f32 %v2801_v37, %v444_v7 }
 0x116   : > { %v540_v25 = vmul.f32 0.2, %v2866_v13  ;;  %v524_v26 = vmul.f32 0.2, %v492_v14  ;;  %v525_v28 = vmul.f32 0.2, %v493_v15 }
 0x117   : > { %v449_v29 = vpop.permute.xlu1 %448  ;;  %v409_v30 = vpop.permute.xlu0 %408  ;;  %v541_v50 = vmul.f32 0.2, %v2890_v24 }
 0x118   : > { %v2910_v39 = vadd.f32 %v2795_v34, %v449_v29  ;;  %v556_v44 = vmax.f32 %v492_v14, %v524_v26  ;;  %v2916_v46 = vadd.f32 %v2801_v37, %v449_v29  ;;  %v494_v47 = vadd.f32 %v2795_v34, %v409_v30 }
 0x119   : > { %v495_v48 = vadd.f32 %v2801_v37, %v409_v30  ;;  %v572_v51 = vmax.f32 %v2866_v13, %v540_v25  ;;  %v557_v7 = vmax.f32 %v493_v15, %v525_v28  ;;  %v649_v28 = vunpack.c.h.b16 %v2906_v36 }
 0x11a   : > { %v2928_v8 = vmul.f32 0.2, %v2910_v39  ;;  %v526_v14 = vmul.f32 0.2, %v494_v47  ;;  %v2931_v30 = vmul.f32 0.2, %v2916_v46  ;;  %v573_v57 = vmax.f32 %v2890_v24, %v541_v50 }
 0x11b   : > { %v527_v26 = vmul.f32 0.2, %v495_v48  ;;  %v419_v29 = vpop.permute.xlu1 %418  ;;  %v414_v43 = vpop.permute.xlu0 %413  ;;  %v2953_v35 = vsel %vm2846_vm14, %v556_v44, -1e+30  ;;  %v2973_v19 = vsel %vm2870_vm1, %v557_v7, -1e+30 }
 0x11c   : > { %v2934_v13 = vadd.f32 %v2795_v34, %v419_v29  ;;  %v496_v56 = vadd.f32 %v2795_v34, %v414_v43  ;;  %v558_v41 = vmax.f32 %v494_v47, %v526_v14  ;;  %v497_v2 = vadd.f32 %v2801_v37, %v414_v43 }
 0x11d   : > { %v559_v27 = vmax.f32 %v495_v48, %v527_v26  ;;  %v2961_v52 = vadd.f32 %v2801_v37, %v419_v29  ;;  %v574_v3 = vmax.f32 %v2910_v39, %v2928_v8  ;;  %v2977_v44 = vsel %vm2874_vm2, %v572_v51, -1e+30 }
 0x11e   : > { %v528_v40 = vmul.f32 0.2, %v496_v56  ;;  %v529_v43 = vmul.f32 0.2, %v497_v2  ;;  %v575_v42 = vmax.f32 %v2916_v46, %v2931_v30  ;;  %v2982_v53 = vmul.f32 0.2, %v2934_v13 }
 0x11f   : > { %v459_v24 = vpop.permute.xlu1 %458  ;;  %v454_v38 = vpop.permute.xlu0 %453  ;;  %v732_v39 = vmax.f32 %v2953_v35, %v2973_v19  ;;  %v2988_v16 = vsel %vm2878_vm4, %v558_v41, -1e+30  ;;  %v3010_v62 = vmul.f32 0.2, %v2961_v52  ;;  %v3015_v41 = vsel %vm2894_vm5, %v559_v27, -1e+30 }
 0x120   : > { %v560_v17 = vmax.f32 %v496_v56, %v528_v40  ;;  %v2997_v50 = vadd.f32 %v2795_v34, %v459_v24  ;;  %v3000_v46 = vadd.f32 %v2801_v37, %v459_v24  ;;  %v512_v51 = vadd.f32 %v2795_v34, %v454_v38 }
 0x121   : > { %733 = vmax.xlane.f32.xlu0 %v732_v39  ;;  %v513_v40 = vadd.f32 %v2801_v37, %v454_v38  ;;  %v3019_v7 = vsel %vm2898_vm6, %v573_v57, -1e+30  ;;  %vm3023_vm14 = vcmp.ne.s32.totalorder %v626_v60, 0  ;;  %v561_v63 = vmax.f32 %v497_v2, %v529_v43 }
 0x122   : > { %v3028_v8 = vmul.f32 0.2, %v2997_v50  ;;  %v544_v14 = vmul.f32 0.2, %v512_v51  ;;  %v735_v31 = vmax.f32 %v2988_v16, %v3015_v41  ;;  %v3039_v60 = vmul.f32 0.2, %v3000_v46 }
 0x123   : > { %v429_v27 = vpop.permute.xlu1 %428  ;;  %v424_v26 = vpop.permute.xlu0 %423  ;;  %v545_v29 = vmul.f32 0.2, %v513_v40  ;;  %v756_v2 = vmax.f32 %v2977_v44, %v3019_v7  ;;  %v562_v56 = vmax.f32 %v2934_v13, %v2982_v53  ;;  %v3056_v57 = vsel %vm2922_vm7, %v560_v17, -1e+30 }
 0x124   : > { %v3044_v30 = vadd.f32 %v2795_v34, %v429_v27  ;;  %736 = vmax.xlane.f32.xlu1 %v735_v31  ;;  %v3049_v49 = vadd.f32 %v2801_v37, %v429_v27  ;;  %v3052_v0 = vadd.f32 %v2795_v34, %v424_v26  ;;  %vm3060_vm1 = vcmp.ne.s32.totalorder %v628_v4, 0 }
 0x125   : > { %vm3066_vm2 = vcmp.ne.s32.totalorder %v629_v9, 0  ;;  %v563_v24 = vmax.f32 %v2961_v52, %v3010_v62  ;;  %v578_v59 = vmax.f32 %v2997_v50, %v3028_v8  ;;  %757 = vmax.xlane.f32.xlu0 %v756_v2  ;;  %v501_v4 = vadd.f32 %v2801_v37, %v424_v26 }
 0x126   : > { %v3075_v38 = vmul.f32 0.2, %v3044_v30  ;;  %v576_v53 = vmax.f32 %v512_v51, %v544_v14  ;;  %v532_v39 = vmul.f32 0.2, %v3052_v0  ;;  %v3081_v58 = vsel %vm2939_vm9, %v561_v63, -1e+30 }
 0x127   : > { %v3085_v9 = vsel %vm2945_vm10, %v574_v3, -1e+30  ;;  %v469_v52 = vpop.permute.xlu1 %468  ;;  %v464_v17 = vpop.permute.xlu0 %463  ;;  %vm3095_vm4 = vcmp.ne.s32.totalorder %v643_v5, 0  ;;  %v579_v25 = vmax.f32 %v3000_v46, %v3039_v60  ;;  %v577_v15 = vmax.f32 %v513_v40, %v545_v29 }
 0x128   : > { %v533_v3 = vmul.f32 0.2, %v501_v4  ;;  %v738_v63 = vmax.f32 %v3056_v57, %v3081_v58  ;;  %v3104_v14 = vmul.f32 0.2, %v3049_v49  ;;  %v3108_v1 = vsel %vm2965_vm11, %v575_v42, -1e+30 }
 0x129   : > { %v3111_v55 = vadd.f32 %v2795_v34, %v469_v52  ;;  %v3114_v5 = vadd.f32 %v2801_v37, %v469_v52  ;;  %vm3118_vm5 = vcmp.ne.s32.totalorder %v644_v20, 0  ;;  %v566_v40 = vmax.f32 %v3044_v30, %v3075_v38 }
 0x12a   : > { %739 = vmax.xlane.f32.xlu1 %v738_v63  ;;  %v759_v47 = vmax.f32 %v3085_v9, %v3108_v1  ;;  %v516_v42 = vadd.f32 %v2795_v34, %v464_v17  ;;  %v517_v31 = vadd.f32 %v2801_v37, %v464_v17  ;;  %vm3130_vm6 = vcmp.ne.s32.totalorder %v645_v21, 0 }
 0x12b   : > { %vm3136_vm7 = vcmp.ne.s32.totalorder %v630_v10, 0  ;;  %v564_v60 = vmax.f32 %v3052_v0, %v532_v39  ;;  %v565_v29 = vmax.f32 %v501_v4, %v533_v3  ;;  %v3148_v6 = vmul.f32 0.2, %v3111_v55  ;;  %v439_v10 = vpop.permute.xlu1 %438  ;;  %v434_v2 = vpop.permute.xlu0 %433 }
 0x12c   : > { %v3152_v21 = vsel %vm2992_vm12, %v576_v53, -1e+30  ;;  %760 = vmax.xlane.f32.xlu0 %v759_v47  ;;  %v548_v52 = vmul.f32 0.2, %v516_v42  ;;  %v549_v17 = vmul.f32 0.2, %v517_v31  ;;  %v3159_v22 = vadd.f32 %v2795_v34, %v439_v10 }
 0x12d   : > { %v3156_v61 = vsel %vm3005_vm13, %v577_v15, -1e+30  ;;  %vm3163_vm9 = vcmp.ne.s32.totalorder %v632_v33, 0  ;;  %v3747_v48 = vunpack.c.h.b16 %v2859_v11  ;;  %v3750_v53 = vunpack.c.l.b16 %v2863_v12 }
 0x12e   : > { %v567_v39 = vmax.f32 %v3049_v49, %v3104_v14  ;;  %v551_v33 = vmul.f32 0.2, %v3114_v5  ;;  %v762_v15 = vmax.f32 %v3152_v21, %v3156_v61  ;;  %v3186_v11 = vsel %vm3023_vm14, %v562_v56, -1e+30 }
 0x12f   : > { %vm3169_vm10 = vcmp.ne.s32.totalorder %v3747_v48, 0  ;;  %vm3175_vm11 = vcmp.ne.s32.totalorder %v3750_v53, 0  ;;  %v3753_v3 = vunpack.c.h.b16 %v2863_v12  ;;  %v582_v47 = vmax.f32 %v3111_v55, %v3148_v6 }
 0x130   : > { %v580_v48 = vmax.f32 %v516_v42, %v548_v52  ;;  %v3198_v49 = vsel %vm3034_vm15, %v563_v24, -1e+30  ;;  %v3201_v14 = vadd.f32 %v2801_v37, %v439_v10  ;;  %763 = vmax.xlane.f32.xlu1 %v762_v15  ;;  %v538_v12 = vmul.f32 0.2, %v3159_v22 }
 0x131   : > { %vm3190_vm12 = vcmp.ne.s32.totalorder %v3753_v3, 0  ;;  %v741_v54 = vmax.f32 %v3186_v11, %v3198_v49  ;;  %v504_v56 = vadd.f32 %v2795_v34, %v434_v2  ;;  %v505_v53 = vadd.f32 %v2801_v37, %v434_v2  ;;  %v479_v3 = vpop.permute.xlu1 %478 }
 0x132   : > { %v3756_v55 = vunpack.c.l.b16 %v2906_v36  ;;  %vm3216_vm14 = vcmp.ne.s32.totalorder %v649_v28, 0  ;;  %v581_v42 = vmax.f32 %v517_v31, %v549_v17  ;;  %v3222_v6 = vsel %vm3060_vm1, %v564_v60, -1e+30 }
 0x133   : > { %v3226_v10 = vsel %vm3066_vm2, %v565_v29, -1e+30  ;;  %v522_v2 = vadd.f32 %v2795_v34, %v479_v3  ;;  %742 = vmax.xlane.f32.xlu0 %v741_v54  ;;  %v539_v52 = vmul.f32 0.2, %v3201_v14  ;;  %v536_v15 = vmul.f32 0.2, %v504_v56 }
 0x134   : > { %vm3210_vm13 = vcmp.ne.s32.totalorder %v3756_v55, 0  ;;  %v537_v36 = vmul.f32 0.2, %v505_v53  ;;  %v744_v28 = vmax.f32 %v3222_v6, %v3226_v10  ;;  %v474_v55 = vpop.permute.xlu0 %473  ;;  %v583_v31 = vmax.f32 %v3114_v5, %v551_v33 }
 0x135   : > { %v3238_v43 = vsel %vm3089_vm3, %v578_v59, -1e+30  ;;  %v3242_v13 = vsel %vm3095_vm4, %v579_v25, -1e+30  ;;  %v523_v60 = vadd.f32 %v2801_v37, %v479_v3  ;;  %v570_v29 = vmax.f32 %v3159_v22, %v538_v12 }
 0x136   : > { %v568_v17 = vmax.f32 %v504_v56, %v536_v15  ;;  %v569_v54 = vmax.f32 %v505_v53, %v537_v36  ;;  %745 = vmax.xlane.f32.xlu1 %v744_v28  ;;  %v765_v5 = vmax.f32 %v3238_v43, %v3242_v13  ;;  %v554_v33 = vmul.f32 0.2, %v522_v2  ;;  %v2105_v15 = vld [vmem:[#allocation9 + $0x40] sm:$0xff]   ;;  %v2107_v28 = vld [vmem:[#allocation9 + $0x48] sm:$0xff]  }
 0x137   : > { %v520_v50 = vadd.f32 %v2795_v34, %v474_v55  ;;  %v521_v8 = vadd.f32 %v2801_v37, %v474_v55  ;;  %v3252_v59 = vsel %vm3118_vm5, %v580_v48, -1e+30  ;;  %v571_v62 = vmax.f32 %v3201_v14, %v539_v52  ;;  %v2106_v36 = vld [vmem:[#allocation9] sm:$0xff]   ;;  %1931 = vmatprep.subr.bf16.mxu0 %v2105_v15  ;;  %1995 = vmatprep.subr.bf16.mxu1 %v2105_v15  ;;  %v2108_v55 = vld [vmem:[#allocation9 + $0x8] sm:$0xff]   ;;  %v3372_v15 = vld [vmem:[#allocation2 + $0x58] sm:$0xff] }
 0x138   : > { %766 = vmax.xlane.f32.xlu0 %v765_v5  ;;  %v3257_v51 = vsel %vm3130_vm6, %v581_v42, -1e+30  ;;  %v3264_v25 = vsel %vm3136_vm7, %v566_v40, -1e+30  ;;  %v3268_v34 = vsel %vm3142_vm8, %v567_v39, -1e+30  ;;  %v3761_v0 = vunpack.c.l.b16 %v2887_v23  ;;  %1932 = vmatpush3.bf16.msra.mxu0 %v2106_v36 }
 0x139   : > { %v555_v37 = vmul.f32 0.2, %v523_v60  ;;  %v552_v46 = vmul.f32 0.2, %v520_v50  ;;  %v553_v22 = vmul.f32 0.2, %v521_v8  ;;  %v768_v48 = vmax.f32 %v3252_v59, %v3257_v51  ;;  %2003 = vmatpush3.bf16.msra.mxu1 %v2106_v36  ;;  %1933 = vmatprep.subr.bf16.mxu0 %v2107_v28 }
 0x13a   : > { %v747_v27 = vmax.f32 %v3264_v25, %v3268_v34  ;;  %v3276_v30 = vsel %vm3163_vm9, %v568_v17, -1e+30  ;;  %v3280_v38 = vsel %vm3169_vm10, %v569_v54, -1e+30  ;;  %v3284_v40 = vsel %vm3175_vm11, %v582_v47, -1e+30  ;;  %1996 = vmatprep.subr.bf16.mxu1 %v2107_v28 }
 0x13b   : > { %v584_v20 = vmax.f32 %v520_v50, %v552_v46  ;;  %v585_v26 = vmax.f32 %v521_v8, %v553_v22  ;;  %769 = vmax.xlane.f32.xlu1 %v768_v48  ;;  %v750_v39 = vmax.f32 %v3276_v30, %v3280_v38  ;;  %v3290_v14 = vsel %vm3190_vm12, %v583_v31, -1e+30  ;;  %v3322_v31 = vld [vmem:[#allocation2] sm:$0xff]  ;;  %v3325_v17 = vld [vmem:[#allocation2 + $0x8] sm:$0xff]  ;;  %v2109_v22 = vld [vmem:[#allocation9 + $0x50] sm:$0xff]  }
 0x13c   : > { %748 = vmax.xlane.f32.xlu0 %v747_v27  ;;  %vm666_vm15 = vcmp.ne.s32.totalorder %v3761_v0, 0  ;;  %v3762_v4 = vunpack.c.h.b16 %v2887_v23  ;;  %v651_v47 = vunpack.c.h.b16 %v2957_v45  ;;  %v586_v56 = vmax.f32 %v522_v2, %v554_v33  ;;  %1934 = vmatpush3.bf16.msra.mxu0 %v2108_v55  ;;  %v3327_v54 = vld [vmem:[#allocation2 + $0x40] sm:$0xff]  ;;  %v3344_v46 = vld [vmem:[#allocation2 + $0x48] sm:$0xff]  ;;  %v2110_v48 = vld [vmem:[#allocation9 + $0x10] sm:$0xff]  }
 0x13d   : > { %v3300_v12 = vsel %vm3210_vm13, %v584_v20, -1e+30  ;;  %v3304_v63 = vsel %vm3216_vm14, %v585_v26, -1e+30  ;;  %v771_v53 = vmax.f32 %v3284_v40, %v3290_v14  ;;  %v587_v3 = vmax.f32 %v523_v60, %v555_v37  ;;  %2004 = vmatpush3.bf16.msra.mxu1 %v2108_v55  ;;  %1935 = vmatprep.subr.bf16.mxu0 %v2109_v22  ;;  %v2111_v0 = vld [vmem:[#allocation9 + $0x58] sm:$0xff]   ;;  %v2114_v36 = vld [vmem:[#allocation9 + $0x20] sm:$0xff]  }
 0x13e   : > { %vm667_vm1 = vcmp.ne.s32.totalorder %v3762_v4, 0  ;;  %v774_v23 = vmax.f32 %v3300_v12, %v3304_v63  ;;  %v3310_v42 = vsel %vm666_vm15, %v570_v29, -1e+30  ;;  %vm682_vm2 = vcmp.ne.s32.totalorder %v650_v18, 0  ;;  %1997 = vmatprep.subr.bf16.mxu1 %v2109_v22  ;;  %v3359_v18 = vld [vmem:[#allocation2 + $0x18] sm:$0xff] }
 0x13f   : > { %751 = vmax.xlane.f32.xlu1 %v750_v39  ;;  %v3312_v45 = vsel %vm667_vm1, %v571_v62, -1e+30  ;;  %vm683_vm3 = vcmp.ne.s32.totalorder %v651_v47, 0  ;;  %v3316_v24 = vsel %vm682_vm2, %v586_v56, -1e+30  ;;  %v3339_v62 = vld [vmem:[#allocation2 + $0x10] sm:$0xff] }
 0x140   : > { %772 = vmax.xlane.f32.xlu0 %v771_v53  ;;  %v753_v32 = vmax.f32 %v3310_v42, %v3312_v45  ;;  %3763 = vst [vmem:[#allocation18_spill] sm:$0xff] %v3316_v24  ;;  %v3318_v2 = vsel %vm683_vm3, %v587_v3, -1e+30  ;;  %v3354_v39 = vld [vmem:[#allocation2 + $0x50] sm:$0xff]  ;;  %1936 = vmatpush3.bf16.msra.mxu0 %v2110_v48  ;;  %v2112_v47 = vld [vmem:[#allocation9 + $0x18] sm:$0xff]   ;;  %v3364_v3 = vld [vmem:[#allocation2 + $0x20] sm:$0xff] }
 0x141   : > { %3764 = vst [vmem:[#allocation19_spill] sm:$0xff] %v3318_v2  ;;  %v777_v52 = vmax.f32 %v3316_v24, %v3318_v2  ;;  %2005 = vmatpush3.bf16.msra.mxu1 %v2110_v48  ;;  %1937 = vmatprep.subr.bf16.mxu0 %v2111_v0 }
 0x142   : > { %1998 = vmatprep.subr.bf16.mxu1 %v2111_v0 }
 0x143   : > { %775 = vmax.xlane.f32.xlu1 %v774_v23 }
 0x144   : > { %754 = vmax.xlane.f32.xlu0 %v753_v32  ;;  %1938 = vmatpush3.bf16.msra.mxu0 %v2112_v47  ;;  %v2113_v32 = vld [vmem:[#allocation9 + $0x60] sm:$0xff]  }
 0x145   : > { %2006 = vmatpush3.bf16.msra.mxu1 %v2112_v47  ;;  %1939 = vmatprep.subr.bf16.mxu0 %v2113_v32 }
 0x146   : > { %1999 = vmatprep.subr.bf16.mxu1 %v2113_v32  ;;  %v2117_v32 = vld [vmem:[#allocation9 + $0x70] sm:$0xff]  }
 0x148   : > { %778 = vmax.xlane.f32.xlu0 %v777_v52  ;;  %1940 = vmatpush3.bf16.msra.mxu0 %v2114_v36 }
 0x149   : > { %2007 = vmatpush3.bf16.msra.mxu1 %v2114_v36 }
 0x1ae   : > { %v734_v60 = vpop.xlane.xlu0 %733 }
 0x1af   : > { %v780_v29 = vmax.f32 %v3322_v31, %v734_v60 }
 0x1b1   : > { %1502 = vst.msk [vmem:[#allocation2] sm:$0xff] %vm329_vm0, %v780_v29  ;;  %846 = vperm.xlu1 %2103, %v780_v29   ;;  %v737_v5 = vpop.xlane.xlu1 %736  ;;  %v796_v28 = vsub.f32 %v3322_v31, %v780_v29  ;;  %v2115_v31 = vld [vmem:[#allocation9 + $0x68] sm:$0xff]  }
 0x1b2   : > { %v3331_v33 = vmax.f32 %v3325_v17, %v737_v5  ;;  %v758_v50 = vpop.xlane.xlu0 %757  ;;  %v3388_v29 = vld [vmem:[#allocation2 + $0x28] sm:$0xff]  ;;  %1941 = vmatprep.subr.bf16.mxu0 %v2115_v31  ;;  %2000 = vmatprep.subr.bf16.mxu1 %v2115_v31 }
 0x1b3   : > { %v3334_v8 = vmax.f32 %v3327_v54, %v758_v50  ;;  %v3385_v50 = vld [vmem:[#allocation2 + $0x60] sm:$0xff]  ;;  %v812_v22 = vmul.f32 1.442695, %v796_v28 }
 0x1b4   : > { %1503 = vst.msk [vmem:[#allocation2 + $0x8] sm:$0xff] %vm329_vm0, %v3331_v33  ;;  %851 = vperm.xlu0 %2104, %v3331_v33   ;;  %v797_v24 = vsub.f32 %v3325_v17, %v3331_v33 }
 0x1b5   : > { %1510 = vst.msk [vmem:[#allocation2 + $0x40] sm:$0xff] %vm329_vm0, %v3334_v8  ;;  %886 = vperm.xlu1 %2103, %v3334_v8   ;;  %2121 = vpow2.f32 %v812_v22  ;;  %v2120_v22 = vld [vmem:[#allocation9 + $0x38] sm:$0xff]  }
 0x1b7   : > { %v740_v37 = vpop.xlane.xlu1 %739 }
 0x1b8   : > { %v3347_v27 = vmax.f32 %v3339_v62, %v740_v37  ;;  %v2116_v37 = vld [vmem:[#allocation9 + $0x28] sm:$0xff]  }
 0x1b9   : > { %v761_v20 = vpop.xlane.xlu0 %760  ;;  %1942 = vmatpush3.bf16.msra.mxu0 %v2116_v37  ;;  %2008 = vmatpush3.bf16.msra.mxu1 %v2116_v37 }
 0x1ba   : > { %1504 = vst.msk [vmem:[#allocation2 + $0x10] sm:$0xff] %vm329_vm0, %v3347_v27  ;;  %v3352_v26 = vmax.f32 %v3344_v46, %v761_v20  ;;  %v798_v48 = vsub.f32 %v3339_v62, %v3347_v27  ;;  %v3404_v62 = vld [vmem:[#allocation2 + $0x68] sm:$0xff]  ;;  %1943 = vmatprep.subr.bf16.mxu0 %v2117_v32  ;;  %2001 = vmatprep.subr.bf16.mxu1 %v2117_v32 }
 0x1bc   : > { %1511 = vst.msk [vmem:[#allocation2 + $0x48] sm:$0xff] %vm329_vm0, %v3352_v26  ;;  %891 = vperm.xlu1 %2103, %v3352_v26  }
 0x1bd   : > { %v764_v4 = vpop.xlane.xlu1 %763 }
 0x1be   : > { %v3362_v56 = vmax.f32 %v3354_v39, %v764_v4 }
 0x1c0   : > { %v743_v53 = vpop.xlane.xlu0 %742  ;;  %1512 = vst.msk [vmem:[#allocation2 + $0x50] sm:$0xff] %vm329_vm0, %v3362_v56  ;;  %856 = vperm.xlu1 %2103, %v3347_v27   ;;  %v2118_v27 = vld [vmem:[#allocation9 + $0x30] sm:$0xff]   ;;  %v806_v17 = vsub.f32 %v3354_v39, %v3362_v56 }
 0x1c1   : > { %v3369_v23 = vmax.f32 %v3359_v18, %v743_v53  ;;  %v722_v53 = vld [vmem:[#allocation2 + $0x30] sm:$0xff]  ;;  %1944 = vmatpush3.bf16.msra.mxu0 %v2118_v27  ;;  %2009 = vmatpush3.bf16.msra.mxu1 %v2118_v27 }
 0x1c3   : > { %v746_v52 = vpop.xlane.xlu1 %745  ;;  %1505 = vst.msk [vmem:[#allocation2 + $0x18] sm:$0xff] %vm329_vm0, %v3369_v23 }
 0x1c4   : > { %v3378_v55 = vmax.f32 %v3364_v3, %v746_v52  ;;  %861 = vperm.xlu1 %2103, %v3369_v23   ;;  %v816_v52 = vmul.f32 1.442695, %v798_v48 }
 0x1c5   : > { %v767_v60 = vpop.xlane.xlu0 %766 }
 0x1c6   : > { %1506 = vst.msk [vmem:[#allocation2 + $0x20] sm:$0xff] %vm329_vm0, %v3378_v55  ;;  %v3383_v5 = vmax.f32 %v3372_v15, %v767_v60  ;;  %v800_v36 = vsub.f32 %v3364_v3, %v3378_v55  ;;  %v723_v3 = vld [vmem:[#allocation2 + $0x38] sm:$0xff]  ;;  %2123 = vpow2.f32 %v816_v52  ;;  %v804_v52 = vsub.f32 %v3327_v54, %v3334_v8 }
 0x1c7   : > { %v832_v54 = vmul.f32 1.442695, %v806_v17 }
 0x1c8   : > { %1513 = vst.msk [vmem:[#allocation2 + $0x58] sm:$0xff] %vm329_vm0, %v3383_v5  ;;  %v770_v20 = vpop.xlane.xlu1 %769  ;;  %896 = vperm.xlu1 %2103, %v3362_v56   ;;  %v820_v48 = vmul.f32 1.442695, %v800_v36  ;;  %v828_v33 = vmul.f32 1.442695, %v804_v52 }
 0x1c9   : > { %v3395_v0 = vmax.f32 %v3385_v50, %v770_v20  ;;  %v749_v4 = vpop.xlane.xlu0 %748  ;;  %v730_v20 = vld [vmem:[#allocation2 + $0x70] sm:$0xff] }
 0x1ca   : > { %v3398_v47 = vmax.f32 %v3388_v29, %v749_v4  ;;  %v2119_v4 = vld [vmem:[#allocation9 + $0x78] sm:$0xff]   ;;  %2125 = vpow2.f32 %v820_v48 }
 0x1cb   : > { %1514 = vst.msk [vmem:[#allocation2 + $0x60] sm:$0xff] %vm329_vm0, %v3395_v0  ;;  %906 = vperm.xlu0 %2104, %v3395_v0   ;;  %1945 = vmatprep.subr.bf16.mxu0 %v2119_v4  ;;  %v808_v8 = vsub.f32 %v3385_v50, %v3395_v0  ;;  %v805_v0 = vsub.f32 %v3344_v46, %v3352_v26 }
 0x1cc   : > { %1507 = vst.msk [vmem:[#allocation2 + $0x28] sm:$0xff] %vm329_vm0, %v3398_v47  ;;  %v752_v28 = vpop.xlane.xlu1 %751  ;;  %901 = vperm.xlu1 %2103, %v3383_v5   ;;  %2002 = vmatprep.subr.bf16.mxu1 %v2119_v4  ;;  %v2122_v4 = vpop.eup %2121  ;;  %v801_v39 = vsub.f32 %v3388_v29, %v3398_v47 }
 0x1cd   : > { %v786_v60 = vmax.f32 %v722_v53, %v752_v28  ;;  %v773_v31 = vpop.xlane.xlu0 %772  ;;  %1946 = vmatpush3.bf16.msra.mxu0 %v2120_v22  ;;  %2010 = vmatpush3.bf16.msra.mxu1 %v2120_v22 }
 0x1ce   : > { %v3411_v37 = vmax.f32 %v3404_v62, %v773_v31  ;;  %v822_v48 = vmul.f32 1.442695, %v801_v39 }
 0x1cf   : > { %1508 = vst.msk [vmem:[#allocation2 + $0x30] sm:$0xff] %vm329_vm0, %v786_v60  ;;  %876 = vperm.xlu0 %2104, %v786_v60   ;;  %v802_v2 = vsub.f32 %v722_v53, %v786_v60  ;;  %v3421_v53 = vld [vmem:[#allocation2 + $0x78] sm:$0xff] }
 0x1d0   : > { %1515 = vst.msk [vmem:[#allocation2 + $0x68] sm:$0xff] %vm329_vm0, %v3411_v37  ;;  %v776_v32 = vpop.xlane.xlu1 %775  ;;  %866 = vperm.xlu1 %2103, %v3378_v55   ;;  %v799_v55 = vsub.f32 %v3359_v18, %v3369_v23  ;;  %v836_v18 = vmul.f32 1.442695, %v808_v8  ;;  %v809_v46 = vsub.f32 %v3404_v62, %v3411_v37 }
 0x1d1   : > { %v794_v27 = vmax.f32 %v730_v20, %v776_v32  ;;  %v755_v28 = vpop.xlane.xlu0 %754  ;;  %v824_v36 = vmul.f32 1.442695, %v802_v2  ;;  %v814_v32 = vmul.f32 1.442695, %v797_v24  ;;  %v2124_v2 = vpop.eup %2123 }
 0x1d2   : > { %v787_v31 = vmax.f32 %v723_v3, %v755_v28  ;;  %v818_v24 = vmul.f32 1.442695, %v799_v55 }
 0x1d3   : > { %1516 = vst.msk [vmem:[#allocation2 + $0x70] sm:$0xff] %vm329_vm0, %v794_v27  ;;  %916 = vperm.xlu0 %2104, %v794_v27   ;;  %2127 = vpow2.f32 %v824_v36  ;;  %v810_v23 = vsub.f32 %v730_v20, %v794_v27  ;;  %v830_v20 = vmul.f32 1.442695, %v805_v0  ;;  %v807_v27 = vsub.f32 %v3372_v15, %v3383_v5 }
 0x1d4   : > { %1509 = vst.msk [vmem:[#allocation2 + $0x38] sm:$0xff] %vm329_vm0, %v787_v31  ;;  %871 = vperm.xlu1 %2103, %v3398_v47   ;;  %2129 = vpow2.f32 %v814_v32  ;;  %v2126_v56 = vpop.eup %2125  ;;  %v803_v28 = vsub.f32 %v723_v3, %v787_v31  ;;  %v838_v32 = vmul.f32 1.442695, %v809_v46  ;;  %v2217_v46 = vld [vmem:[%s2725_s22] sm:$0xff] }
 0x1d5   : > { %v779_v60 = vpop.xlane.xlu0 %778  ;;  %2131 = vpow2.f32 %v828_v33  ;;  %v840_v50 = vmul.f32 1.442695, %v810_v23 }
 0x1d6   : > { %v795_v22 = vmax.f32 %v3421_v53, %v779_v60  ;;  %2133 = vpow2.f32 %v832_v54  ;;  %v826_v36 = vmul.f32 1.442695, %v803_v28  ;;  %v834_v60 = vmul.f32 1.442695, %v807_v27 }
 0x1d7   : > { %1150 = vperm.xlu0 %2104, %v2122_v4   ;;  %2135 = vpow2.f32 %v818_v24 }
 0x1d8   : > { %1517 = vst.msk [vmem:[#allocation2 + $0x78] sm:$0xff] %vm329_vm0, %v795_v22  ;;  %911 = vperm.xlu1 %2103, %v3411_v37   ;;  %2137 = vpow2.f32 %v836_v18  ;;  %v811_v17 = vsub.f32 %v3421_v53, %v795_v22 }
 0x1d9   : > { %2139 = vpow2.f32 %v822_v48 }
 0x1da   : > { %2141 = vpow2.f32 %v840_v50  ;;  %v842_v5 = vmul.f32 1.442695, %v811_v17 }
 0x1db   : > { %1160 = vperm.xlu0 %2104, %v2124_v2   ;;  %2143 = vpow2.f32 %v826_v36 }
 0x1dc   : > { %881 = vperm.xlu1 %2103, %v787_v31   ;;  %2145 = vpow2.f32 %v830_v20 }
 0x1dd   : > { %v2128_v52 = vpop.eup %2127  ;;  %2147 = vpow2.f32 %v834_v60 }
 0x1de   : > { %v2130_v29 = vpop.eup %2129  ;;  %2149 = vpow2.f32 %v838_v32 }
 0x1df   : > { %1170 = vperm.xlu0 %2104, %v2126_v56   ;;  %v2132_v47 = vpop.eup %2131  ;;  %2151 = vpow2.f32 %v842_v5 }
 0x1e0   : > { %921 = vperm.xlu1 %2103, %v795_v22   ;;  %v2134_v3 = vpop.eup %2133 }
 0x1e1   : > { %v2136_v31 = vpop.eup %2135 }
 0x1e2   : > { %v2138_v26 = vpop.eup %2137 }
 0x1e3   : > { %1180 = vperm.xlu0 %2104, %v2128_v52   ;;  %v2140_v4 = vpop.eup %2139 }
 0x1e4   : > { %1155 = vperm.xlu1 %2103, %v2130_v29   ;;  %v2142_v33 = vpop.eup %2141 }
 0x1e5   : > { %v2144_v15 = vpop.eup %2143 }
 0x1e6   : > { %v2146_v55 = vpop.eup %2145 }
 0x1e7   : > { %1190 = vperm.xlu0 %2104, %v2132_v47   ;;  %v2148_v2 = vpop.eup %2147 }
 0x1e8   : > { %1165 = vperm.xlu1 %2103, %v2136_v31   ;;  %v2150_v62 = vpop.eup %2149 }
 0x1e9   : > { %v2152_v37 = vpop.eup %2151 }
 0x1eb   : > { %1200 = vperm.xlu0 %2104, %v2134_v3  }
 0x1ec   : > { %1175 = vperm.xlu1 %2103, %v2140_v4  }
 0x1ef   : > { %1210 = vperm.xlu0 %2104, %v2138_v26   ;;  %v2218_v26 = vld [vmem:[%s2725_s22 + $0x8] sm:$0xff] }
 0x1f0   : > { %1185 = vperm.xlu1 %2103, %v2144_v15   ;;  %v1890_v4 = vcombine.low %v2217_v46, %v2218_v26  ;;  %v1891_v17 = vcombine.high %v2217_v46, %v2218_v26 }
 0x1f3   : > { %1220 = vperm.xlu0 %2104, %v2142_v33  }
 0x1f4   : > { %1195 = vperm.xlu1 %2103, %v2146_v55  }
 0x1f8   : > { %1205 = vperm.xlu1 %2103, %v2148_v2  }
 0x1fc   : > { %1215 = vperm.xlu1 %2103, %v2150_v62  }
 0x200   : > { %1225 = vperm.xlu1 %2103, %v2152_v37  }
 0x230   : > { %v847_v54 = vpop.permute.xlu1 %846 }
 0x231   : > { %v924_v8 = vsub.f32 %v2953_v35, %v847_v54  ;;  %v925_v53 = vsub.f32 %v2973_v19, %v847_v54 }
 0x233   : > { %v956_v22 = vmul.f32 1.442695, %v924_v8  ;;  %v852_v24 = vpop.permute.xlu0 %851  ;;  %v958_v23 = vmul.f32 1.442695, %v925_v53  ;;  %v2219_v53 = vld [vmem:[%s2725_s22 + $0x40] sm:$0xff] }
 0x234   : > { %v887_v39 = vpop.permute.xlu1 %886  ;;  %v926_v56 = vsub.f32 %v2988_v16, %v852_v24  ;;  %v927_v18 = vsub.f32 %v3015_v41, %v852_v24 }
 0x235   : > { %v940_v48 = vsub.f32 %v2977_v44, %v887_v39  ;;  %2153 = vpow2.f32 %v956_v22  ;;  %v941_v50 = vsub.f32 %v3019_v7, %v887_v39  ;;  %v2220_v22 = vld [vmem:[%s2725_s22 + $0x48] sm:$0xff] }
 0x236   : > { %v960_v28 = vmul.f32 1.442695, %v926_v56  ;;  %v962_v52 = vmul.f32 1.442695, %v927_v18  ;;  %v1898_v24 = vcombine.low %v2219_v53, %v2220_v22 }
 0x237   : > { %v988_v35 = vmul.f32 1.442695, %v940_v48  ;;  %v990_v16 = vmul.f32 1.442695, %v941_v50 }
 0x238   : > { %2155 = vpow2.f32 %v960_v28 }
 0x239   : > { %2157 = vpow2.f32 %v958_v23  ;;  %v1899_v23 = vcombine.high %v2219_v53, %v2220_v22 }
 0x23a   : > { %2159 = vpow2.f32 %v962_v52 }
 0x23b   : > { %v892_v0 = vpop.permute.xlu1 %891  ;;  %2161 = vpow2.f32 %v988_v35 }
 0x23c   : > { %v942_v19 = vsub.f32 %v3085_v9, %v892_v0  ;;  %v943_v36 = vsub.f32 %v3108_v1, %v892_v0 }
 0x23e   : > { %v992_v29 = vmul.f32 1.442695, %v942_v19  ;;  %v994_v41 = vmul.f32 1.442695, %v943_v36 }
 0x23f   : > { %v857_v44 = vpop.permute.xlu1 %856  ;;  %v2154_v7 = vpop.eup %2153 }
 0x240   : > { %2163 = vpow2.f32 %v992_v29  ;;  %v928_v47 = vsub.f32 %v3056_v57, %v857_v44  ;;  %v929_v20 = vsub.f32 %v3081_v58, %v857_v44 }
 0x241   : > { %2165 = vpow2.f32 %v994_v41 }
 0x242   : > { %2167 = vpow2.f32 %v990_v16  ;;  %v2156_v27 = vpop.eup %2155  ;;  %v964_v3 = vmul.f32 1.442695, %v928_v47  ;;  %v966_v57 = vmul.f32 1.442695, %v929_v20 }
 0x243   : > { %v862_v9 = vpop.permute.xlu1 %861  ;;  %v1020_v60 = vpack.c.bf16 %v2156_v27, %v2154_v7  ;;  %v2158_v32 = vpop.eup %2157  ;;  %v2221_v27 = vld [vmem:[%s2725_s22 + $0x10] sm:$0xff] }
 0x244   : > { %v930_v1 = vsub.f32 %v3186_v11, %v862_v9  ;;  %v931_v31 = vsub.f32 %v3198_v49, %v862_v9  ;;  %v2160_v33 = vpop.eup %2159  ;;  %2169 = vpow2.f32 %v964_v3  ;;  %v2222_v3 = vld [vmem:[%s2725_s22 + $0x18] sm:$0xff] }
 0x245   : > { %v1021_v55 = vpack.c.bf16 %v2160_v33, %v2158_v32  ;;  %v1116_v2 = vmul.bf16 %v1890_v4, %v1020_v60  ;;  %v2162_v49 = vpop.eup %2161  ;;  %v1892_v9 = vcombine.low %v2221_v27, %v2222_v3  ;;  %v1893_v46 = vcombine.high %v2221_v27, %v2222_v3 }
 0x246   : > { %v968_v15 = vmul.f32 1.442695, %v930_v1  ;;  %v970_v5 = vmul.f32 1.442695, %v931_v31 }
 0x247   : > { %v897_v58 = vpop.permute.xlu1 %896  ;;  %v1117_v62 = vmul.bf16 %v1891_v17, %v1021_v55 }
 0x248   : > { %2171 = vpow2.f32 %v968_v15  ;;  %v944_v11 = vsub.f32 %v3152_v21, %v897_v58  ;;  %v945_v54 = vsub.f32 %v3156_v61, %v897_v58 }
 0x249   : > { %2173 = vpow2.f32 %v970_v5  ;;  %1404 = vmatprep.mubr.bf16.mxu0 %v1117_v62  ;;  %v2224_v62 = vld [vmem:[%s2725_s22 + $0x58] sm:$0xff] }
 0x24a   : > { %v2164_v37 = vpop.eup %2163  ;;  %2175 = vpow2.f32 %v966_v57  ;;  %v907_v8 = vpop.permute.xlu0 %906  ;;  %v996_v56 = vmul.f32 1.442695, %v944_v11  ;;  %1405 = vmatmul.mubr.bf16.vlgmr.msra.gmra.mrb[0].mxu0 %v1116_v2  ;;  %v998_v61 = vmul.f32 1.442695, %v945_v54 }
 0x24b   : > { %v2166_v39 = vpop.eup %2165  ;;  %v902_v18 = vpop.permute.xlu1 %901  ;;  %v1028_v48 = vpack.c.bf16 %v2164_v37, %v2162_v49  ;;  %v948_v50 = vsub.f32 %v3252_v59, %v907_v8  ;;  %v949_v47 = vsub.f32 %v3257_v51, %v907_v8  ;;  %v2223_v49 = vld [vmem:[%s2725_s22 + $0x50] sm:$0xff] }
 0x24c   : > { %v2168_v28 = vpop.eup %2167  ;;  %v946_v21 = vsub.f32 %v3238_v43, %v902_v18  ;;  %v947_v52 = vsub.f32 %v3242_v13, %v902_v18  ;;  %2177 = vpow2.f32 %v996_v56  ;;  %v1901_v37 = vcombine.high %v2223_v49, %v2224_v62 }
 0x24d   : > { %v1029_v35 = vpack.c.bf16 %v2166_v39, %v2168_v28  ;;  %v1124_v36 = vmul.bf16 %v1898_v24, %v1028_v48  ;;  %v1004_v59 = vmul.f32 1.442695, %v948_v50  ;;  %v1006_v32 = vmul.f32 1.442695, %v949_v47 }
 0x24e   : > { %v1000_v0 = vmul.f32 1.442695, %v946_v21  ;;  %v1002_v19 = vmul.f32 1.442695, %v947_v52  ;;  %v877_v41 = vpop.permute.xlu0 %876  ;;  %v2170_v13 = vpop.eup %2169  ;;  %v1900_v54 = vcombine.low %v2223_v49, %v2224_v62 }
 0x24f   : > { %v1125_v16 = vmul.bf16 %v1899_v23, %v1029_v35  ;;  %v867_v29 = vpop.permute.xlu1 %866  ;;  %v936_v31 = vsub.f32 %v3276_v30, %v877_v41  ;;  %v937_v30 = vsub.f32 %v3280_v38, %v877_v41  ;;  %v2225_v41 = vld [vmem:[%s2725_s22 + $0x20] sm:$0xff] }
 0x250   : > { %2179 = vpow2.f32 %v1000_v0  ;;  %v932_v44 = vsub.f32 %v3222_v6, %v867_v29  ;;  %v933_v43 = vsub.f32 %v3226_v10, %v867_v29 }
 0x251   : > { %2181 = vpow2.f32 %v1002_v19  ;;  %1436 = vmatprep.mubr.bf16.mxu1 %v1125_v16  ;;  %v980_v5 = vmul.f32 1.442695, %v936_v31  ;;  %v982_v39 = vmul.f32 1.442695, %v937_v30  ;;  %v2230_v30 = vld [vmem:[%s2725_s22 + $0x38] sm:$0xff] }
 0x252   : > { %v2172_v7 = vpop.eup %2171  ;;  %2183 = vpow2.f32 %v998_v61  ;;  %v972_v20 = vmul.f32 1.442695, %v932_v44  ;;  %1437 = vmatmul.mubr.bf16.vlgmr.msra.gmra.mrb[0].mxu1 %v1124_v36  ;;  %v974_v60 = vmul.f32 1.442695, %v933_v43  ;;  %v917_v58 = vpop.permute.xlu0 %916  ;;  %v3765_v36 = vld [vmem:[#allocation18_spill] sm:$0xff]  ;;  %v2226_v44 = vld [vmem:[%s2725_s22 + $0x28] sm:$0xff] }
 0x253   : > { %v2174_v1 = vpop.eup %2173  ;;  %v872_v6 = vpop.permute.xlu1 %871  ;;  %v1022_v10 = vpack.c.bf16 %v2172_v7, %v2170_v13  ;;  %2185 = vpow2.f32 %v1004_v59  ;;  %v952_v38 = vsub.f32 %v3300_v12, %v917_v58  ;;  %v1894_v43 = vcombine.low %v2225_v41, %v2226_v44 }
 0x254   : > { %v2176_v26 = vpop.eup %2175  ;;  %v934_v51 = vsub.f32 %v3264_v25, %v872_v6  ;;  %v935_v4 = vsub.f32 %v3268_v34, %v872_v6  ;;  %2187 = vpow2.f32 %v972_v20  ;;  %v1895_v7 = vcombine.high %v2225_v41, %v2226_v44  ;;  %v2228_v6 = vld [vmem:[%s2725_s22 + $0x68] sm:$0xff] }
 0x255   : > { %v1023_v17 = vpack.c.bf16 %v2174_v1, %v2176_v26  ;;  %v1118_v15 = vmul.bf16 %v1892_v9, %v1022_v10  ;;  %2189 = vpow2.f32 %v974_v60  ;;  %v1012_v21 = vmul.f32 1.442695, %v952_v38  ;;  %v2227_v60 = vld [vmem:[%s2725_s22 + $0x60] sm:$0xff] }
 0x256   : > { %v976_v33 = vmul.f32 1.442695, %v934_v51  ;;  %v978_v57 = vmul.f32 1.442695, %v935_v4  ;;  %v2178_v2 = vpop.eup %2177  ;;  %v1903_v51 = vcombine.high %v2227_v60, %v2228_v6 }
 0x257   : > { %v912_v55 = vpop.permute.xlu1 %911  ;;  %v1119_v11 = vmul.bf16 %v1893_v46, %v1023_v17  ;;  %v1902_v46 = vcombine.low %v2227_v60, %v2228_v6 }
 0x258   : > { %2191 = vpow2.f32 %v976_v33  ;;  %v950_v25 = vsub.f32 %v3284_v40, %v912_v55  ;;  %v951_v34 = vsub.f32 %v3290_v14, %v912_v55  ;;  %v953_v40 = vsub.f32 %v3304_v63, %v917_v58 }
 0x259   : > { %2193 = vpow2.f32 %v978_v57  ;;  %1412 = vmatprep.mubr.bf16.mxu0 %v1119_v11 }
 0x25a   : > { %v2180_v8 = vpop.eup %2179  ;;  %2195 = vpow2.f32 %v1006_v32  ;;  %v1008_v53 = vmul.f32 1.442695, %v950_v25  ;;  %v1010_v22 = vmul.f32 1.442695, %v951_v34  ;;  %1413 = vmatmul.mubr.bf16.gmra.mrb[4].mxu0 %v1118_v15  ;;  %v1014_v61 = vmul.f32 1.442695, %v953_v40 }
 0x25b   : > { %v2182_v24 = vpop.eup %2181  ;;  %2197 = vpow2.f32 %v980_v5  ;;  %v882_v14 = vpop.permute.xlu1 %881  ;;  %v1030_v56 = vpack.c.bf16 %v2180_v8, %v2178_v2  ;;  %v2229_v15 = vld [vmem:[%s2725_s22 + $0x30] sm:$0xff]  ;;  %v2232_v8 = vld [vmem:[%s2725_s22 + $0x78] sm:$0xff] }
 0x25c   : > { %v2184_v18 = vpop.eup %2183  ;;  %2199 = vpow2.f32 %v1008_v53  ;;  %v938_v23 = vsub.f32 %v3310_v42, %v882_v14  ;;  %v939_v48 = vsub.f32 %v3312_v45, %v882_v14  ;;  %v3766_v42 = vld [vmem:[#allocation19_spill] sm:$0xff]  ;;  %v1896_v5 = vcombine.low %v2229_v15, %v2230_v30 }
 0x25d   : > { %2201 = vpow2.f32 %v1010_v22  ;;  %v1031_v28 = vpack.c.bf16 %v2182_v24, %v2184_v18  ;;  %v1126_v50 = vmul.bf16 %v1900_v54, %v1030_v56  ;;  %v2186_v35 = vpop.eup %2185  ;;  %v1897_v11 = vcombine.high %v2229_v15, %v2230_v30  ;;  %v2231_v54 = vld [vmem:[%s2725_s22 + $0x70] sm:$0xff] }
 0x25e   : > { %v984_v12 = vmul.f32 1.442695, %v938_v23  ;;  %v986_v52 = vmul.f32 1.442695, %v939_v48  ;;  %2203 = vpow2.f32 %v982_v39  ;;  %v2188_v19 = vpop.eup %2187  ;;  %v1904_v38 = vcombine.low %v2231_v54, %v2232_v8  ;;  %v1151_v23 = vpop.permute.xlu0 %1150 }
 0x25f   : > { %v1127_v63 = vmul.bf16 %v1901_v37, %v1031_v28  ;;  %v922_v0 = vpop.permute.xlu1 %921  ;;  %v2190_v45 = vpop.eup %2189  ;;  %v1905_v24 = vcombine.high %v2231_v54, %v2232_v8 }
 0x260   : > { %2205 = vpow2.f32 %v984_v12  ;;  %v954_v16 = vsub.f32 %v3765_v36, %v922_v0  ;;  %v955_v29 = vsub.f32 %v3766_v42, %v922_v0 }
 0x261   : > { %2207 = vpow2.f32 %v986_v52  ;;  %1444 = vmatprep.mubr.bf16.mxu1 %v1127_v63  ;;  %v1133_v63 = vld [vmem:[#allocation3 + $0x8] sm:$0xff] }
 0x262   : > { %v2192_v13 = vpop.eup %2191  ;;  %2209 = vpow2.f32 %v1012_v21  ;;  %v1016_v47 = vmul.f32 1.442695, %v954_v16  ;;  %v1018_v59 = vmul.f32 1.442695, %v955_v29  ;;  %1445 = vmatmul.mubr.bf16.gmra.mrb[4].mxu1 %v1126_v50  ;;  %v1161_v28 = vpop.permute.xlu0 %1160  ;;  %v1132_v50 = vld [vmem:[#allocation3] sm:$0xff] }
 0x263   : > { %v2194_v20 = vpop.eup %2193  ;;  %2211 = vpow2.f32 %v1014_v61  ;;  %v1024_v27 = vpack.c.bf16 %v2192_v13, %v2188_v19  ;;  %v1156_v48 = vpop.permute.xlu1 %1155  ;;  %v1228_v36 = vmul.f32 %v1151_v23, %v1132_v50 }
 0x264   : > { %v2196_v3 = vpop.eup %2195  ;;  %2213 = vpow2.f32 %v1016_v47  ;;  %v1025_v9 = vpack.c.bf16 %v2194_v20, %v2190_v45  ;;  %v1229_v45 = vmul.f32 %v1156_v48, %v1133_v63 }
 0x265   : > { %v2198_v1 = vpop.eup %2197  ;;  %2215 = vpow2.f32 %v1018_v59  ;;  %v1120_v31 = vmul.bf16 %v1894_v43, %v1024_v27  ;;  %v1140_v43 = vld [vmem:[#allocation3 + $0x40] sm:$0xff] }
 0x266   : > { %v2200_v10 = vpop.eup %2199  ;;  %v1121_v26 = vmul.bf16 %v1895_v7, %v1025_v9  ;;  %v3493_v12 = vpop.permute.xlu0 %1170  ;;  %v1141_v7 = vld [vmem:[#allocation3 + $0x48] sm:$0xff] }
 0x267   : > { %v2202_v4 = vpop.eup %2201  ;;  %v1032_v32 = vpack.c.bf16 %v2200_v10, %v2186_v35  ;;  %v1166_v21 = vpop.permute.xlu1 %1165 }
 0x268   : > { %1420 = vmatprep.mubr.bf16.mxu0 %v1121_v26  ;;  %v1033_v17 = vpack.c.bf16 %v2202_v4, %v2196_v3  ;;  %v2204_v33 = vpop.eup %2203  ;;  %v1134_v26 = vld [vmem:[#allocation3 + $0x10] sm:$0xff]  ;;  %v1135_v4 = vld [vmem:[#allocation3 + $0x18] sm:$0xff] }
 0x269   : > { %1421 = vmatmul.mubr.bf16.gmra.mrb[8].mxu0 %v1120_v31  ;;  %v1128_v57 = vmul.bf16 %v1902_v46, %v1032_v32  ;;  %v1231_v30 = vmul.f32 %v1166_v21, %v1135_v4  ;;  %v1144_v21 = vld [vmem:[#allocation3 + $0x60] sm:$0xff] }
 0x26a   : > { %v2206_v58 = vpop.eup %2205  ;;  %v1129_v55 = vmul.bf16 %v1903_v51, %v1033_v17  ;;  %v3497_v35 = vpop.permute.xlu0 %1180  ;;  %v1230_v17 = vmul.f32 %v1161_v28, %v1134_v26 }
 0x26b   : > { %v2208_v25 = vpop.eup %2207  ;;  %v1026_v34 = vpack.c.bf16 %v2206_v58, %v2198_v1  ;;  %v3495_v52 = vpop.permute.xlu1 %1175 }
 0x26c   : > { %v2210_v2 = vpop.eup %2209  ;;  %1452 = vmatprep.mubr.bf16.mxu1 %v1129_v55  ;;  %v1027_v49 = vpack.c.bf16 %v2208_v25, %v2204_v33 }
 0x26d   : > { %v2212_v62 = vpop.eup %2211  ;;  %1453 = vmatmul.mubr.bf16.gmra.mrb[8].mxu1 %v1128_v57  ;;  %v1122_v37 = vmul.bf16 %v1896_v5, %v1026_v34 }
 0x26e   : > { %v2214_v53 = vpop.eup %2213  ;;  %v1123_v22 = vmul.bf16 %v1897_v11, %v1027_v49  ;;  %v1191_v13 = vpop.permute.xlu0 %1190  ;;  %v1142_v11 = vld [vmem:[#allocation3 + $0x50] sm:$0xff] }
 0x26f   : > { %v2216_v39 = vpop.eup %2215  ;;  %v1034_v40 = vpack.c.bf16 %v2214_v53, %v2210_v2  ;;  %v3499_v0 = vpop.permute.xlu1 %1185  ;;  %v1236_v3 = vmul.f32 %v1191_v13, %v1140_v43  ;;  %v1143_v2 = vld [vmem:[#allocation3 + $0x58] sm:$0xff] }
 0x270   : > { %1428 = vmatprep.mubr.bf16.mxu0 %v1123_v22  ;;  %v1035_v14 = vpack.c.bf16 %v2216_v39, %v2212_v62  ;;  %v1136_v39 = vld [vmem:[#allocation3 + $0x20] sm:$0xff] }
 0x271   : > { %1429 = vmatmul.mubr.bf16.gmra.mrb[12].mxu0 %v1122_v37  ;;  %v1130_v56 = vmul.bf16 %v1904_v38, %v1034_v40  ;;  %v1232_v23 = vmul.f32 %v3493_v12, %v1136_v39 }
 0x272   : > { %v1131_v18 = vmul.bf16 %v1905_v24, %v1035_v14  ;;  %v1201_v25 = vpop.permute.xlu0 %1200 }
 0x273   : > { %v1196_v20 = vpop.permute.xlu1 %1195  ;;  %v1238_v37 = vmul.f32 %v1201_v25, %v1142_v11 }
 0x274   : > { %1460 = vmatprep.mubr.bf16.mxu1 %v1131_v18  ;;  %v1237_v60 = vmul.f32 %v1196_v20, %v1141_v7 }
 0x275   : > { %1461 = vmatmul.mubr.bf16.gmra.mrb[12].mxu1 %v1130_v56  ;;  %v1137_v56 = vld [vmem:[#allocation3 + $0x28] sm:$0xff] }
 0x276   : > { %v1211_v50 = vpop.permute.xlu0 %1210  ;;  %v1233_v63 = vmul.f32 %v3495_v52, %v1137_v56 }
 0x277   : > { %v1206_v49 = vpop.permute.xlu1 %1205 }
 0x278   : > { %v1239_v53 = vmul.f32 %v1206_v49, %v1143_v2 }
 0x31d   : > { %v1947_v61 = vpop.f32.mrb[0].mxu0 }
 0x31e   : > { %v1948_v19 = vpop.f32.mrb[1].mxu0 }
 0x31f   : > { %v1949_v16 = vadd.f32 %v1948_v19, %v1947_v61  ;;  %v1950_v42 = vpop.f32.mrb[2].mxu0 }
 0x320   : > { %v1951_v29 = vpop.f32.mrb[3].mxu0 }
 0x321   : > { %v1469_v41 = vadd.f32 %v1949_v16, %v1228_v36  ;;  %v1952_v44 = vadd.f32 %v1951_v29, %v1950_v42  ;;  %v1145_v42 = vld [vmem:[#allocation3 + $0x68] sm:$0xff]  ;;  %v1216_v29 = vpop.permute.xlu1 %1215 }
 0x323   : > { %1485 = vst [vmem:[#allocation3] sm:$0xff] %v1469_v41  ;;  %v1470_v47 = vadd.f32 %v1952_v44, %v1229_v45  ;;  %v1240_v41 = vmul.f32 %v1211_v50, %v1144_v21 }
 0x325   : > { %v1971_v59 = vpop.f32.mrb[0].mxu1  ;;  %1486 = vst [vmem:[#allocation3 + $0x8] sm:$0xff] %v1470_v47  ;;  %v1138_v47 = vld [vmem:[#allocation3 + $0x30] sm:$0xff] }
 0x326   : > { %v1972_v27 = vpop.f32.mrb[1].mxu1 }
 0x327   : > { %v1973_v9 = vadd.f32 %v1972_v27, %v1971_v59  ;;  %v1974_v1 = vpop.f32.mrb[2].mxu1  ;;  %v1241_v59 = vmul.f32 %v1216_v29, %v1145_v42 }
 0x328   : > { %v1975_v31 = vpop.f32.mrb[3].mxu1 }
 0x329   : > { %v1477_v6 = vadd.f32 %v1973_v9, %v1236_v3  ;;  %v1976_v46 = vadd.f32 %v1975_v31, %v1974_v1  ;;  %v1139_v3 = vld [vmem:[#allocation3 + $0x38] sm:$0xff]  ;;  %v1234_v9 = vmul.f32 %v3497_v35, %v1138_v47 }
 0x32a   : > { %v1235_v26 = vmul.f32 %v3499_v0, %v1139_v3 }
 0x32b   : > { %1493 = vst [vmem:[#allocation3 + $0x40] sm:$0xff] %v1477_v6  ;;  %v1478_v10 = vadd.f32 %v1976_v46, %v1237_v60  ;;  %v1146_v6 = vld [vmem:[#allocation3 + $0x70] sm:$0xff]  ;;  %v1221_v46 = vpop.permute.xlu0 %1220 }
 0x32d   : > { %1494 = vst [vmem:[#allocation3 + $0x48] sm:$0xff] %v1478_v10  ;;  %v1953_v51 = vpop.f32.mrb[4].mxu0 }
 0x32e   : > { %v1954_v32 = vpop.f32.mrb[5].mxu0 }
 0x32f   : > { %v1955_v33 = vadd.f32 %v1954_v32, %v1953_v51  ;;  %v1956_v57 = vpop.f32.mrb[6].mxu0 }
 0x330   : > { %v1957_v15 = vpop.f32.mrb[7].mxu0 }
 0x331   : > { %v1471_v5 = vadd.f32 %v1955_v33, %v1230_v17  ;;  %v1958_v58 = vadd.f32 %v1957_v15, %v1956_v57  ;;  %v1147_v17 = vld [vmem:[#allocation3 + $0x78] sm:$0xff]  ;;  %v1226_v33 = vpop.permute.xlu1 %1225  ;;  %v1242_v15 = vmul.f32 %v1221_v46, %v1146_v6 }
 0x333   : > { %1487 = vst [vmem:[#allocation3 + $0x10] sm:$0xff] %v1471_v5  ;;  %v1472_v55 = vadd.f32 %v1958_v58, %v1231_v30 }
 0x335   : > { %1488 = vst [vmem:[#allocation3 + $0x18] sm:$0xff] %v1472_v55  ;;  %v1977_v34 = vpop.f32.mrb[4].mxu1  ;;  %v1243_v55 = vmul.f32 %v1226_v33, %v1147_v17 }
 0x336   : > { %v1978_v62 = vpop.f32.mrb[5].mxu1 }
 0x337   : > { %v1979_v54 = vadd.f32 %v1978_v62, %v1977_v34  ;;  %v1980_v8 = vpop.f32.mrb[6].mxu1 }
 0x338   : > { %v1981_v38 = vpop.f32.mrb[7].mxu1 }
 0x339   : > { %v1479_v22 = vadd.f32 %v1979_v54, %v1238_v37  ;;  %v1982_v24 = vadd.f32 %v1981_v38, %v1980_v8 }
 0x33b   : > { %1495 = vst [vmem:[#allocation3 + $0x50] sm:$0xff] %v1479_v22  ;;  %v1480_v40 = vadd.f32 %v1982_v24, %v1239_v53 }
 0x33c   : > { %v1959_v14 = vpop.f32.mrb[8].mxu0 }
 0x33d   : > { %1496 = vst [vmem:[#allocation3 + $0x58] sm:$0xff] %v1480_v40  ;;  %v1960_v18 = vpop.f32.mrb[9].mxu0 }
 0x33e   : > { %v1961_v48 = vadd.f32 %v1960_v18, %v1959_v14  ;;  %v1962_v28 = vpop.f32.mrb[10].mxu0 }
 0x33f   : > { %v1963_v61 = vpop.f32.mrb[11].mxu0 }
 0x340   : > { %v1473_v19 = vadd.f32 %v1961_v48, %v1232_v23  ;;  %v1964_v36 = vadd.f32 %v1963_v61, %v1962_v28  ;;  %v1983_v16 = vpop.f32.mrb[8].mxu1 }
 0x341   : > { %v1984_v45 = vpop.f32.mrb[9].mxu1 }
 0x342   : > { %1489 = vst [vmem:[#allocation3 + $0x20] sm:$0xff] %v1473_v19  ;;  %v1474_v44 = vadd.f32 %v1964_v36, %v1233_v63  ;;  %v1985_v43 = vadd.f32 %v1984_v45, %v1983_v16  ;;  %v1986_v13 = vpop.f32.mrb[10].mxu1 }
 0x343   : > { %v1987_v12 = vpop.f32.mrb[11].mxu1 }
 0x344   : > { %1490 = vst [vmem:[#allocation3 + $0x28] sm:$0xff] %v1474_v44  ;;  %v1481_v7 = vadd.f32 %v1985_v43, %v1240_v41  ;;  %v1988_v20 = vadd.f32 %v1987_v12, %v1986_v13  ;;  %v1965_v27 = vpop.f32.mrb[12].mxu0 }
 0x345   : > { %v1966_v52 = vpop.f32.mrb[13].mxu0 }
 0x346   : > { %1497 = vst [vmem:[#allocation3 + $0x60] sm:$0xff] %v1481_v7  ;;  %v1482_v1 = vadd.f32 %v1988_v20, %v1241_v59  ;;  %v1967_v31 = vadd.f32 %v1966_v52, %v1965_v27  ;;  %v1968_v60 = vpop.f32.mrb[14].mxu0 }
 0x347   : > { %v1969_v10 = vpop.f32.mrb[15].mxu0 }
 0x348   : > { %1498 = vst [vmem:[#allocation3 + $0x68] sm:$0xff] %v1482_v1  ;;  %v1475_v51 = vadd.f32 %v1967_v31, %v1234_v9  ;;  %v1970_v4 = vadd.f32 %v1969_v10, %v1968_v60  ;;  %v1989_v32 = vpop.f32.mrb[12].mxu1 }
 0x349   : > { %v1990_v57 = vpop.f32.mrb[13].mxu1 }
 0x34a   : > { %1491 = vst [vmem:[#allocation3 + $0x30] sm:$0xff] %v1475_v51  ;;  %v1476_v30 = vadd.f32 %v1970_v4, %v1235_v26  ;;  %v1991_v35 = vadd.f32 %v1990_v57, %v1989_v32  ;;  %v1992_v5 = vpop.f32.mrb[14].mxu1 }
 0x34b   : > { %v1993_v58 = vpop.f32.mrb[15].mxu1 }
 0x34c   : > { %1492 = vst [vmem:[#allocation3 + $0x38] sm:$0xff] %v1476_v30  ;;  %v1483_v11 = vadd.f32 %v1991_v35, %v1242_v15  ;;  %v1994_v25 = vadd.f32 %v1993_v58, %v1992_v5 }
 0x34e   : > { %1499 = vst [vmem:[#allocation3 + $0x70] sm:$0xff] %v1483_v11  ;;  %v1484_v34 = vadd.f32 %v1994_v25, %v1243_v55 }
 0x350   : > { %1500 = vst [vmem:[#allocation3 + $0x78] sm:$0xff] %v1484_v34 }
 0x351 PF: > { %v3505_v0 = vld [vmem:[#allocation3 + $0x10] sm:$0xff]  ;;  %v3507_v2 = vld [vmem:[#allocation3] sm:$0xff]  ;;  %v3509_v49 = vld [vmem:[#allocation3 + $0x18] sm:$0xff]  ;;  %v2471_v62 = vmov 32   ;;  %s1930_s20 = sshll.u32 %s2449_s6, 11  ;;  %s1743_s25 = sshll.u32 %s2762_s9, 4  ;;  %s3622_s25 = int_to_ptr.vmem [resolvable:$true] %s1743_s25 }
 0x352   : > { %2234 = vset.pattern.permute.xlu1 %v2471_v62  ;;  %2233 = vset.pattern.permute.xlu0 %v2471_v62  ;;  %2235 = vrcp.f32 %v3505_v0  ;;  %v3512_v37 = vld [vmem:[#allocation3 + $0x8] sm:$0xff]  ;;  %v3518_v8 = vld [vmem:[#allocation3 + $0x20] sm:$0xff]  ;;  %vm1555_vm0 = vcmp.gt.f32.partialorder %v3505_v0, 0.0  ;;  %vm1553_vm4 = vcmp.gt.f32.partialorder %v3507_v2, 0.0  ;;  %vm1556_vm5 = vcmp.gt.f32.partialorder %v3509_v49, 0.0  ;;  %v1683_v51 = vld [vmem:[%s2736_s21 + $0x10] sm:$0xff]  ;;  %s3620_s16 = scalar_lea.hbm %s3680_s5, %s1930_s20 }
 0x353   : > { %2237 = vrcp.f32 %v3507_v2  ;;  %v3515_v54 = vld [vmem:[#allocation3 + $0x28] sm:$0xff]  ;;  %v3523_v38 = vld [vmem:[#allocation3 + $0x38] sm:$0xff]  ;;  %v3525_v53 = vld [vmem:[#allocation3 + $0x30] sm:$0xff]  ;;  %vm1554_vm6 = vcmp.gt.f32.partialorder %v3512_v37, 0.0  ;;  %vm1557_vm8 = vcmp.gt.f32.partialorder %v3518_v8, 0.0  ;;  %s3628_s6 = scalar_lea.sflag [#allocation8], %s263_s19 }
 0x354   : > { %2239 = vrcp.f32 %v3509_v49  ;;  %v3531_v22 = vld [vmem:[#allocation3 + $0x48] sm:$0xff]  ;;  %v3534_v39 = vld [vmem:[#allocation3 + $0x40] sm:$0xff]  ;;  %vm1558_vm7 = vcmp.gt.f32.partialorder %v3515_v54, 0.0  ;;  %vm1560_vm9 = vcmp.gt.f32.partialorder %v3523_v38, 0.0  ;;  %vm1559_vm10 = vcmp.gt.f32.partialorder %v3525_v53, 0.0  ;;  %v1684_v35 = vld [vmem:[%s2736_s21 + $0x18] sm:$0xff] }
 0x355   : > { %2241 = vrcp.f32 %v3512_v37  ;;  %v3539_v28 = vld [vmem:[#allocation3 + $0x58] sm:$0xff]  ;;  %v3542_v61 = vld [vmem:[#allocation3 + $0x50] sm:$0xff]  ;;  %vm1562_vm11 = vcmp.gt.f32.partialorder %v3531_v22, 0.0  ;;  %vm1561_vm12 = vcmp.gt.f32.partialorder %v3534_v39, 0.0  ;;  %v1681_v17 = vld [vmem:[%s2736_s21] sm:$0xff]  ;;  %s2365_s10 = scalar_lea.vmem %s3622_s25, 2048 }
 0x356   : > { %2243 = vrcp.f32 %v3515_v54  ;;  %v3547_v36 = vld [vmem:[#allocation3 + $0x68] sm:$0xff]  ;;  %v3550_v29 = vld [vmem:[#allocation3 + $0x60] sm:$0xff]  ;;  %vm1564_vm13 = vcmp.gt.f32.partialorder %v3539_v28, 0.0  ;;  %vm1563_vm14 = vcmp.gt.f32.partialorder %v3542_v61, 0.0  ;;  %p2366_p10 = scmp.ne.s32.totalorder %s3622_s25, %s2365_s10  ;;  %p3767_p1 = scmp.ne.s32.totalorder %s3690_s15, 0 }
 0x357   : > { %2245 = vrcp.f32 %v3518_v8  ;;  %v3555_v44 = vld [vmem:[#allocation3 + $0x78] sm:$0xff]  ;;  %v3558_v47 = vld [vmem:[#allocation3 + $0x70] sm:$0xff]  ;;  %vm1566_vm15 = vcmp.gt.f32.partialorder %v3547_v36, 0.0  ;;  %vm1565_vm1 = vcmp.gt.f32.partialorder %v3550_v29, 0.0  ;;  %v1682_v55 = vld [vmem:[%s2736_s21 + $0x8] sm:$0xff]  ;;  %s2472_s11 = smov [#allocation12]  }
 0x358   : > { %2247 = vrcp.f32 %v3523_v38  ;;  %vm1568_vm2 = vcmp.gt.f32.partialorder %v3555_v44, 0.0  ;;  %vm1567_vm3 = vcmp.gt.f32.partialorder %v3558_v47, 0.0  ;;  %p2367_p3 = pnand %p2366_p10, %p3767_p1  ;;  %s2369_s23 = sshll.u32 %s2472_s11, 4  ;;  %s2370_s23 = int_to_ptr.vmem [resolvable:$false] %s2369_s23 }
 0x359   : > { %2249 = vrcp.f32 %v3525_v53  ;;  %s2371_s24 = scalar_lea.vmem %s2370_s23, 4096  ;;  %p2372_p7 = scmp.lt.s32.totalorder %s3622_s25, %s2370_s23 }
 0x35a   : > { %2251 = vrcp.f32 %v3531_v22  ;;  %p2368_p6 = pneg %p2367_p3  ;;  %p2373_p8 = scmp.lt.s32.totalorder %s2371_s24, %s2365_s10 }
 0x35b   : > { %2253 = vrcp.f32 %v3534_v39 }
 0x35c   : > { %v2236_v24 = vpop.eup %2235  ;;  %2255 = vrcp.f32 %v3539_v28  ;;  %p2374_p0 = por %p2373_p8, %p2372_p7 }
 0x35d   : > { %v2238_v40 = vpop.eup %2237  ;;  %v1571_v14 = vsel %vm1555_vm0, %v2236_v24, 0.0  ;;  %2257 = vrcp.f32 %v3542_v61 }
 0x35e   : > { %v2240_v56 = vpop.eup %2239  ;;  %1597 = vperm.xlu1 %2234, %v1571_v14   ;;  %v1569_v18 = vsel %vm1553_vm4, %v2238_v40, 0.0  ;;  %2259 = vrcp.f32 %v3547_v36  ;;  %v1685_v40 = vld [vmem:[%s2736_s21 + $0x20] sm:$0xff]  ;;  %p2375_p12 = pnand %p2374_p0, %p2368_p6 }
 0x35f   : > { %v2242_v23 = vpop.eup %2241  ;;  %1587 = vperm.xlu0 %2233, %v1569_v18   ;;  %v1572_v48 = vsel %vm1556_vm5, %v2240_v56, 0.0  ;;  %2261 = vrcp.f32 %v3550_v29 }
 0x360   : > { %v2244_v21 = vpop.eup %2243  ;;  %v1570_v50 = vsel %vm1554_vm6, %v2242_v23, 0.0  ;;  %2263 = vrcp.f32 %v3555_v44 }
 0x361   : > { %v2246_v63 = vpop.eup %2245  ;;  %v1574_v19 = vsel %vm1558_vm7, %v2244_v21, 0.0  ;;  %2265 = vrcp.f32 %v3558_v47  ;;  %v1687_v21 = vld [vmem:[%s2736_s21 + $0x30] sm:$0xff] }
 0x362   : > { %1602 = vperm.xlu1 %2234, %v1572_v48   ;;  %v2248_v16 = vpop.eup %2247  ;;  %v1573_v42 = vsel %vm1557_vm8, %v2246_v63, 0.0 }
 0x363   : > { %1592 = vperm.xlu0 %2233, %v1570_v50   ;;  %v2250_v45 = vpop.eup %2249  ;;  %v1576_v41 = vsel %vm1560_vm9, %v2248_v16, 0.0 }
 0x364   : > { %v2252_v43 = vpop.eup %2251  ;;  %v1575_v13 = vsel %vm1559_vm10, %v2250_v45, 0.0  ;;  %v1689_v45 = vld [vmem:[%s2736_s21 + $0x40] sm:$0xff] }
 0x365   : > { %v2254_v12 = vpop.eup %2253  ;;  %v1578_v59 = vsel %vm1562_vm11, %v2252_v43, 0.0 }
 0x366   : > { %1612 = vperm.xlu1 %2234, %v1574_v19   ;;  %v2256_v7 = vpop.eup %2255  ;;  %v1577_v20 = vsel %vm1561_vm12, %v2254_v12, 0.0 }
 0x367   : > { %1607 = vperm.xlu0 %2233, %v1573_v42   ;;  %v2258_v27 = vpop.eup %2257  ;;  %v1580_v3 = vsel %vm1564_vm13, %v2256_v7, 0.0  ;;  %v1691_v7 = vld [vmem:[%s2736_s21 + $0x50] sm:$0xff] }
 0x368   : > { %v2260_v52 = vpop.eup %2259  ;;  %v1579_v9 = vsel %vm1563_vm14, %v2258_v27, 0.0 }
 0x369   : > { %v2262_v1 = vpop.eup %2261  ;;  %v1582_v31 = vsel %vm1566_vm15, %v2260_v52, 0.0 }
 0x36a   : > { %1622 = vperm.xlu1 %2234, %v1576_v41   ;;  %v2264_v60 = vpop.eup %2263  ;;  %v1581_v6 = vsel %vm1565_vm1, %v2262_v1, 0.0  ;;  %v1693_v1 = vld [vmem:[%s2736_s21 + $0x60] sm:$0xff] }
 0x36b   : > { %1617 = vperm.xlu0 %2233, %v1575_v13   ;;  %v2266_v46 = vpop.eup %2265  ;;  %v1584_v10 = vsel %vm1568_vm2, %v2264_v60, 0.0 }
 0x36c   : > { %v1583_v26 = vsel %vm1567_vm3, %v2266_v46, 0.0 }
 0x36e   : > { %1632 = vperm.xlu1 %2234, %v1578_v59  }
 0x36f   : > { %1627 = vperm.xlu0 %2233, %v1577_v20  }
 0x372   : > { %1642 = vperm.xlu1 %2234, %v1580_v3   ;;  %v1694_v3 = vld [vmem:[%s2736_s21 + $0x68] sm:$0xff] }
 0x373   : > { %1637 = vperm.xlu0 %2233, %v1579_v9  }
 0x376   : > { %1652 = vperm.xlu1 %2234, %v1582_v31  }
 0x377   : > { %1647 = vperm.xlu0 %2233, %v1581_v6  }
 0x37a   : > { %1662 = vperm.xlu1 %2234, %v1584_v10  }
 0x37b   : > { %1657 = vperm.xlu0 %2233, %v1583_v26   ;;  %v1695_v26 = vld [vmem:[%s2736_s21 + $0x70] sm:$0xff] }
 0x3dd   : > { %v1598_v4 = vpop.permute.xlu1 %1597 }
 0x3de   : > { %v1667_v32 = vmul.f32 %v1598_v4, %v3505_v0  ;;  %v1588_v33 = vpop.permute.xlu0 %1587 }
 0x3df   : > { %v1665_v57 = vmul.f32 %v1588_v33, %v3507_v2  ;;  %v1686_v2 = vld [vmem:[%s2736_s21 + $0x28] sm:$0xff] }
 0x3e0   : > { %v1699_v15 = vadd.f32 %v1683_v51, %v1667_v32 }
 0x3e1   : > { %v1697_v30 = vadd.f32 %v1681_v17, %v1665_v57  ;;  %v1603_v5 = vpop.permute.xlu1 %1602 }
 0x3e2   : > { %1715 = vst [vmem:[%s2762_s9 + $0x10] sm:$0xff] %v1699_v15  ;;  %v1668_v58 = vmul.f32 %v1603_v5, %v3509_v49  ;;  %v1593_v11 = vpop.permute.xlu0 %1592 }
 0x3e3   : > { %1713 = vst [vmem:[%s2762_s9] sm:$0xff] %v1697_v30  ;;  %v1666_v25 = vmul.f32 %v1593_v11, %v3512_v37  ;;  %v1688_v37 = vld [vmem:[%s2736_s21 + $0x38] sm:$0xff] }
 0x3e4   : > { %v1700_v34 = vadd.f32 %v1684_v35, %v1668_v58 }
 0x3e5   : > { %v1698_v0 = vadd.f32 %v1682_v55, %v1666_v25  ;;  %v1613_v62 = vpop.permute.xlu1 %1612 }
 0x3e6   : > { %1716 = vst [vmem:[%s2762_s9 + $0x18] sm:$0xff] %v1700_v34  ;;  %v1670_v24 = vmul.f32 %v1613_v62, %v3515_v54  ;;  %v1608_v14 = vpop.permute.xlu0 %1607 }
 0x3e7   : > { %1714 = vst [vmem:[%s2762_s9 + $0x8] sm:$0xff] %v1698_v0  ;;  %v1669_v49 = vmul.f32 %v1608_v14, %v3518_v8  ;;  %v1690_v8 = vld [vmem:[%s2736_s21 + $0x48] sm:$0xff] }
 0x3e8   : > { %v1702_v56 = vadd.f32 %v1686_v2, %v1670_v24 }
 0x3e9   : > { %v1701_v18 = vadd.f32 %v1685_v40, %v1669_v49  ;;  %v1623_v23 = vpop.permute.xlu1 %1622 }
 0x3ea   : > { %1718 = vst [vmem:[%s2762_s9 + $0x28] sm:$0xff] %v1702_v56  ;;  %v1672_v48 = vmul.f32 %v1623_v23, %v3523_v38  ;;  %v1618_v50 = vpop.permute.xlu0 %1617 }
 0x3eb   : > { %1717 = vst [vmem:[%s2762_s9 + $0x20] sm:$0xff] %v1701_v18  ;;  %v1671_v54 = vmul.f32 %v1618_v50, %v3525_v53  ;;  %v1692_v53 = vld [vmem:[%s2736_s21 + $0x58] sm:$0xff] }
 0x3ec   : > { %v1704_v63 = vadd.f32 %v1688_v37, %v1672_v48 }
 0x3ed   : > { %v1703_v19 = vadd.f32 %v1687_v21, %v1671_v54  ;;  %v1633_v16 = vpop.permute.xlu1 %1632 }
 0x3ee   : > { %1720 = vst [vmem:[%s2762_s9 + $0x38] sm:$0xff] %v1704_v63  ;;  %v1674_v42 = vmul.f32 %v1633_v16, %v3531_v22  ;;  %v1628_v41 = vpop.permute.xlu0 %1627 }
 0x3ef   : > { %1719 = vst [vmem:[%s2762_s9 + $0x30] sm:$0xff] %v1703_v19  ;;  %v1673_v38 = vmul.f32 %v1628_v41, %v3534_v39 }
 0x3f0   : > { %v1706_v43 = vadd.f32 %v1690_v8, %v1674_v42 }
 0x3f1   : > { %v1705_v13 = vadd.f32 %v1689_v45, %v1673_v38  ;;  %v1643_v12 = vpop.permute.xlu1 %1642 }
 0x3f2   : > { %1722 = vst [vmem:[%s2762_s9 + $0x48] sm:$0xff] %v1706_v43  ;;  %v1676_v59 = vmul.f32 %v1643_v12, %v3539_v28  ;;  %v1638_v20 = vpop.permute.xlu0 %1637 }
 0x3f3   : > { %1721 = vst [vmem:[%s2762_s9 + $0x40] sm:$0xff] %v1705_v13  ;;  %v1675_v22 = vmul.f32 %v1638_v20, %v3542_v61  ;;  %v1696_v61 = vld [vmem:[%s2736_s21 + $0x78] sm:$0xff] }
 0x3f4   : > { %v1708_v27 = vadd.f32 %v1692_v53, %v1676_v59 }
 0x3f5   : > { %v1707_v39 = vadd.f32 %v1691_v7, %v1675_v22  ;;  %v1653_v52 = vpop.permute.xlu1 %1652 }
 0x3f6   : > { %1724 = vst [vmem:[%s2762_s9 + $0x58] sm:$0xff] %v1708_v27  ;;  %v1678_v9 = vmul.f32 %v1653_v52, %v3547_v36  ;;  %v1648_v28 = vpop.permute.xlu0 %1647 }
 0x3f7   : > { %1723 = vst [vmem:[%s2762_s9 + $0x50] sm:$0xff] %v1707_v39  ;;  %v1677_v31 = vmul.f32 %v1648_v28, %v3550_v29 }
 0x3f8   : > { %v1710_v60 = vadd.f32 %v1694_v3, %v1678_v9 }
 0x3f9   : > { %v1709_v6 = vadd.f32 %v1693_v1, %v1677_v31  ;;  %v1663_v46 = vpop.permute.xlu1 %1662 }
 0x3fa   : > { %1726 = vst [vmem:[%s2762_s9 + $0x68] sm:$0xff] %v1710_v60  ;;  %v1680_v10 = vmul.f32 %v1663_v46, %v3555_v44  ;;  %v1658_v36 = vpop.permute.xlu0 %1657 }
 0x3fb   : > { %1725 = vst [vmem:[%s2762_s9 + $0x60] sm:$0xff] %v1709_v6  ;;  %v1679_v51 = vmul.f32 %v1658_v36, %v3558_v47 }
 0x3fc   : > { %v1712_v4 = vadd.f32 %v1696_v61, %v1680_v10 }
 0x3fd   : > { %v1711_v29 = vadd.f32 %v1695_v26, %v1679_v51 }
 0x3fe   : > { %1728 = vst [vmem:[%s2762_s9 + $0x78] sm:$0xff] %v1712_v4 }
 0x3ff   : > { %1727 = vst [vmem:[%s2762_s9 + $0x70] sm:$0xff] %v1711_v29 }
 0x400   : > { %2378 = shalt.err (!%p2375_p12)
}
 0x401   : > { %s2379_s19 = scalar_lea.hbm %s3620_s16, 2048  ;;  %s2383_s12 = scalar_lea.hbm %s3680_s5, 4096 }
 0x402   : > { %p2380_p11 = scmp.ne.s32.totalorder %s3620_s16, %s2379_s19  ;;  %p2384_p13 = scmp.lt.u32.totalorder %s3620_s16, %s3680_s5 }
 0x403   : > { %p2385_p4 = scmp.lt.u32.totalorder %s2383_s12, %s2379_s19  ;;  %p2387_p10 = scmp.lt.u32.totalorder %s2379_s19, %s3620_s16 }
 0x404   : > { %p2381_p9 = pnand %p2380_p11, %p3767_p1 }
 0x405   : > { %p2386_p5 = por %p2385_p4, %p2384_p13 }
 0x406   : > { %p2382_p2 = pneg %p2381_p9 }
 0x407   : > { %p2388_p3 = por %p2387_p10, %p2386_p5 }
 0x409   : > { %p2389_p6 = pnand %p2388_p3, %p2382_p2 }
 0x40b   : > { %2392 = shalt.err (!%p2389_p6)
}
 0x40c   : > { %s2473_s26 = smov 128   ;;  %s2474_s20 = smov 8  }
 0x40d   : > { %2019 = dma.vmem_to_hbm [thread:$0]  (%p3767_p1), %s3622_s25, 2048, %s3620_s16, %s3628_s6, %s2473_s26, %s2473_s26, %s2474_s20  }
 0x40e PF: > { %s1758_s27 = sand.u32 1, %s2437_s28   ;;  %p3768_p7 = scmp.ne.s32.totalorder %s3691_s18, 0 }
 0x40f   : > { %p3769_p8 = scmp.ge.s32.totalorder %s2457_s8, 2  ;;  %s1759_s17 = scalar_lea.sflag [#allocation8], %s1758_s27 }
 0x411   : > { %p2033_p0 = pnand %p3769_p8, %p3768_p7 }
 0x413   : > { %2432 = dma.done.wait (!%p2033_p0), %s1759_s17, 2048  }
 0x414   : > { %2434 = vsyncadd (!%p2033_p0), %s1759_s17, 4294965248  ;;  %s26_s8 = sadd.s32 1, %s2457_s8   ;;  %s3770_s28 = smov %s2441_s29 }
 0x415   : > { %p23_p12 = scmp.ge.s32.totalorder %s26_s8, 4   ;;  %s3771_s29 = smov %s2445_s30 }
 0x416   : > { %s3772_s30 = smov %s2565_s14  ;;  %s3773_s6 = smov %s2453_s7 }
 0x417   : > { %s3774_s7 = smov %s3776_s0  ;;  %25 = sbr.rel (!%p23_p12) target bundleno = 19 (0x13), region = 112 }
 0x41e   :  { %1764 = vsyncpa [#allocation7], 1 }
 0x41f   :  { %1766 = vsyncpa [#allocation7 + $0x1], 1 }
 0x420   :  { %1767 = vsyncpa [#allocation10], 1 }
 0x421   :  { %1768 = vsyncpa [#allocation8], 1 }
 0x422   :  { %1770 = vsyncpa [#allocation8 + $0x1], 1 }

</bundles_post_ra>
